<compile_context>
chip_gen: v7x
topology: tpu7x:2x2x1
jax: 0.10.0
libtpu: 0.0.40
codegen_flags: <defaults>
</compile_context>

<pallas_src>
import functools

import jax
import jax.numpy as jnp
from jax import lax
from jax.experimental import pallas as pl
from jax.experimental.pallas import tpu as pltpu


def _round_up(x, m):
    return (x + m - 1) // m * m


def _ssgc_kernel(adj_ref, x_ref, w_ref, b_ref, out_ref,
                 x_cur, x_next, h_sum, *, alpha, coeff, tm, tk, fp):
    """Grid = (K hops, row tiles, contraction tiles); all axes sequential.

    adj_ref: [tm, tk] bf16 tile of A_hat            (streamed / resident)
    x_ref:   [Np, Fp] bf16 input features           (VMEM-resident)
    w_ref:   [Fp, Cp] bf16 linear weight, transposed(VMEM-resident)
    b_ref:   [1,  Cp] f32 bias                      (VMEM-resident)
    out_ref: [tm, Cp] f32 output row tile
    x_cur:   [Np, Fp] bf16 scratch  -- hop-k input features
    x_next:  [Np, Fp] f32  scratch  -- hop-k result (per-row-tile accumulator)
    h_sum:   [Np, Fp] f32  scratch  -- sum_{k} A_hat^k x (unscaled)
    """
    k = pl.program_id(0)   # hop (recurrence -> must be outermost, 'arbitrary')
    i = pl.program_id(1)   # output row tile
    j = pl.program_id(2)   # contraction tile
    nk = pl.num_programs(0)
    ni = pl.num_programs(1)
    nj = pl.num_programs(2)

    row = pl.ds(pl.multiple_of(i * tm, tm), tm)
    col = pl.ds(pl.multiple_of(j * tk, tk), tk)

    # One-time init: stage input features, zero the hop-sum accumulator.
    @pl.when((k == 0) & (i == 0) & (j == 0))
    def _init():
        x_cur[...] = x_ref[...]
        h_sum[...] = jnp.zeros_like(h_sum)

    # MXU: partial product for this (row, contraction) tile, f32 accumulation.
    prod = jnp.dot(adj_ref[...], x_cur[col, :],
                   preferred_element_type=jnp.float32)

    @pl.when(j == 0)
    def _first():
        x_next[row, :] = prod

    @pl.when(j > 0)
    def _accum():
        x_next[row, :] += prod

    # Contraction finished for this row tile of this hop.
    @pl.when(j == nj - 1)
    def _epilogue():
        h_sum[row, :] += x_next[row, :]

        # Last hop: apply alpha / (1-alpha)/K once, then the lane-dense
        # projection to (padded) classes on the MXU, bias added in f32.
        @pl.when(k == nk - 1)
        def _project():
            h = (alpha * x_ref[row, :].astype(jnp.float32)
                 + coeff * h_sum[row, :])
            out_ref[...] = (
                jnp.dot(h.astype(jnp.bfloat16), w_ref[...],
                        preferred_element_type=jnp.float32)
                + b_ref[...]
            )

        # Whole hop finished (all rows): stage x_{k+1} for the next hop.
        @pl.when((i == ni - 1) & (k < nk - 1))
        def _advance():
            x_cur[...] = x_next[...].astype(jnp.bfloat16)


def ssgc_forward(adj_norm, x, weight, bias, *, K, alpha,
                 tile=256, resident_max=2048):
    """adj_norm: [N,N] f32, x: [N,F] f32, weight: [C,F] (torch Linear), bias: [C]."""
    N, F = x.shape
    C = weight.shape[0]

    Np = _round_up(N, tile)
    Fp = _round_up(F, 128)   # lane-dense feature dim
    Cp = _round_up(C, 128)   # lane-dense class dim (avoids masked vst on output)

    if Np <= resident_max:
        # Adjacency block == whole (padded) array; constant block index keeps it
        # VMEM-resident across all K hops (single HBM read).
        tm = tk = Np
    else:
        # Stream adjacency tiles; Pallas double-buffers them against the MXU.
        tm = tk = tile

    # Pad + cast at the boundary: bf16 MXU operands, f32 bias/accumulation.
    adj_p = jnp.zeros((Np, Np), jnp.bfloat16).at[:N, :N].set(
        adj_norm.astype(jnp.bfloat16))
    x_p = jnp.zeros((Np, Fp), jnp.bfloat16).at[:N, :F].set(
        x.astype(jnp.bfloat16))
    w_p = jnp.zeros((Fp, Cp), jnp.bfloat16).at[:F, :C].set(
        weight.T.astype(jnp.bfloat16))
    b_p = jnp.zeros((1, Cp), jnp.float32).at[0, :C].set(
        bias.astype(jnp.float32))

    ni, nj = Np // tm, Np // tk
    grid = (K, ni, nj)
    coeff = (1.0 - alpha) / K

    kernel = functools.partial(
        _ssgc_kernel, alpha=alpha, coeff=coeff, tm=tm, tk=tk, fp=Fp)

    adj_bytes = (Np * Np * 2) if (ni == 1 and nj == 1) else (K * Np * Np * 2)
    cost = pl.CostEstimate(
        flops=2 * K * Np * Np * Fp + 2 * Np * Fp * Cp,
        transcendentals=0,
        bytes_accessed=adj_bytes + Np * Fp * 2 + Fp * Cp * 2 + Cp * 4 + Np * Cp * 4,
    )

    vmem_needed = (
        2 * tm * tk * 2                 # adjacency tile, double-buffered, bf16
        + Np * Fp * 2                   # resident x input (bf16)
        + Fp * Cp * 2 + Cp * 4          # resident W^T (bf16) + bias (f32)
        + 2 * tm * Cp * 4               # output tile, double-buffered, f32
        + Np * Fp * (2 + 4 + 4)         # x_cur (bf16) + x_next + h_sum (f32)
    )
    # Leave headroom; stay under v7x's 64 MiB physical VMEM (~48 MiB budget).
    vmem_limit = int(min(max(vmem_needed + (4 << 20), 32 << 20), 48 << 20))

    out_p = pl.pallas_call(
        kernel,
        out_shape=jax.ShapeDtypeStruct((Np, Cp), jnp.float32),
        grid_spec=pltpu.PrefetchScalarGridSpec(
            num_scalar_prefetch=0,
            grid=grid,
            in_specs=[
                pl.BlockSpec((tm, tk), lambda k, i, j: (i, j)),  # A_hat tiles
                pl.BlockSpec((Np, Fp), lambda k, i, j: (0, 0)),  # x (resident)
                pl.BlockSpec((Fp, Cp), lambda k, i, j: (0, 0)),  # W^T (resident)
                pl.BlockSpec((1, Cp), lambda k, i, j: (0, 0)),   # bias (resident)
            ],
            out_specs=pl.BlockSpec((tm, Cp), lambda k, i, j: (i, 0)),
            scratch_shapes=[
                pltpu.VMEM((Np, Fp), jnp.bfloat16),  # x_cur
                pltpu.VMEM((Np, Fp), jnp.float32),   # x_next
                pltpu.VMEM((Np, Fp), jnp.float32),   # h_sum
            ],
        ),
        compiler_params=pltpu.CompilerParams(
            # Hop axis is a recurrence and row/contraction tiles share scratch,
            # so every axis must stay on one core / in order.
            dimension_semantics=("arbitrary", "arbitrary", "arbitrary"),
            vmem_limit_bytes=vmem_limit,
        ),
        cost_estimate=cost,
    )(adj_p, x_p, w_p, b_p)

    return out_p[:N, :C]


def gcn_norm_dense(edge_index, num_nodes):
    """Dense equivalent of torch_geometric gcn_norm with add_self_loops=True."""
    src, dst = edge_index[0], edge_index[1]
    adj = jnp.zeros((num_nodes, num_nodes), jnp.float32)
    adj = adj.at[dst, src].add(1.0)                      # message source -> target
    adj = adj + jnp.eye(num_nodes, dtype=jnp.float32)    # self loops
    deg = jnp.sum(adj, axis=1)
    dinv = jnp.where(deg > 0, lax.rsqrt(deg), 0.0)
    return dinv[:, None] * adj * dinv[None, :]


def reference_ssgc_f32(adj, x, weight, bias, *, K, alpha):
    h = alpha * x
    xk = x
    for _ in range(K):
        xk = adj @ xk
        h = h + (1.0 - alpha) / K * xk
    return h @ weight.T + bias


def reference_ssgc_bf16_path(adj, x, weight, bias, *, K, alpha):
    """Mirrors the kernel's dtype strategy: bf16 MXU operands, f32 accumulation."""
    f32 = jnp.float32
    adj_b = adj.astype(jnp.bfloat16).astype(f32)
    x0 = x.astype(jnp.bfloat16).astype(f32)
    w_b = weight.T.astype(jnp.bfloat16).astype(f32)
    xk = x0
    s = jnp.zeros_like(x0)
    for _ in range(K):
        xk = adj_b @ xk.astype(jnp.bfloat16).astype(f32)
        s = s + xk
    h = alpha * x0 + (1.0 - alpha) / K * s
    return h.astype(jnp.bfloat16).astype(f32) @ w_b + bias


if __name__ == "__main__":
    # Small shapes implied by SSGC(feature, hidden, classes, dropout, num_layers).
    num_nodes = 16     # N
    feature = 32       # input feature dim
    classes = 8        # output classes
    num_layers = 3     # K
    alpha = 0.05

    key = jax.random.PRNGKey(0)
    k_x, k_w, k_b = jax.random.split(key, 3)

    x = jax.random.normal(k_x, (num_nodes, feature), dtype=jnp.float32)
    weight = jax.random.normal(k_w, (classes, feature), dtype=jnp.float32) * 0.1
    bias = jax.random.normal(k_b, (classes,), dtype=jnp.float32) * 0.1

    # Deterministic edge_index: undirected ring graph on num_nodes nodes.
    idx = jnp.arange(num_nodes, dtype=jnp.int32)
    nxt = (idx + 1) % num_nodes
    edge_index = jnp.stack(
        [jnp.concatenate([idx, nxt]), jnp.concatenate([nxt, idx])], axis=0
    )  # [2, 2N]

    adj_norm = gcn_norm_dense(edge_index, num_nodes)

    out = ssgc_forward(adj_norm, x, weight, bias, K=num_layers, alpha=alpha)
    out = jax.block_until_ready(out)
    assert out.shape == (num_nodes, classes)

    ref_b = reference_ssgc_bf16_path(adj_norm, x, weight, bias,
                                     K=num_layers, alpha=alpha)
    ref_f = reference_ssgc_f32(adj_norm, x, weight, bias,
                               K=num_layers, alpha=alpha)
    assert jnp.allclose(out, ref_b, atol=2e-3, rtol=2e-3), \
        "mismatch vs bf16-path reference"
    assert jnp.allclose(out, ref_f, atol=5e-2, rtol=5e-2), \
        "mismatch vs f32 reference"

    print("KERNEL_OK")
</pallas_src>

<mosaic_0001>
module attributes {stable_mosaic.version = 11 : i64} {
  func.func @_ssgc_kernel(%arg0: i32, %arg1: i32, %arg2: i32, %arg3: memref<256x256xbf16, #tpu.memory_space<vmem>>, %arg4: memref<256x128xbf16, #tpu.memory_space<vmem>>, %arg5: memref<128x128xbf16, #tpu.memory_space<vmem>>, %arg6: memref<1x128xf32, #tpu.memory_space<vmem>>, %arg7: memref<256x128xf32, #tpu.memory_space<vmem>>, %arg8: memref<256x128xbf16, #tpu.memory_space<vmem>>, %arg9: memref<256x128xf32, #tpu.memory_space<vmem>>, %arg10: memref<256x128xf32, #tpu.memory_space<vmem>>) attributes {dimension_semantics = [#tpu.dimension_semantics<arbitrary>, #tpu.dimension_semantics<arbitrary>, #tpu.dimension_semantics<arbitrary>], iteration_bounds = array<i64: 3, 1, 1>, scalar_prefetch = 0 : i64, scratch_operands = 3 : i64, tpu.core_type = #tpu.core_type<tc>, window_params = [{transform_indices = @transform_0, window_bounds = array<i64: 256, 256>}, {pipeline_mode = #tpu.pipeline_mode<synchronous>, transform_indices = @transform_1, window_bounds = array<i64: 256, 128>}, {pipeline_mode = #tpu.pipeline_mode<synchronous>, transform_indices = @transform_2, window_bounds = array<i64: 128, 128>}, {pipeline_mode = #tpu.pipeline_mode<synchronous>, transform_indices = @transform_3, window_bounds = array<i64: 1, 128>}, {transform_indices = @transform_4, window_bounds = array<i64: 256, 128>}]} {
    %c256_i32 = arith.constant 256 : i32
    %0 = arith.muli %arg1, %c256_i32 : i32
    %1 = tpu.assume_multiple %0, 256 : i32
    %c256_i32_0 = arith.constant 256 : i32
    %2 = arith.muli %arg2, %c256_i32_0 : i32
    %3 = tpu.assume_multiple %2, 256 : i32
    %c0_i32 = arith.constant 0 : i32
    %4 = arith.cmpi eq, %arg0, %c0_i32 : i32
    %c0_i32_1 = arith.constant 0 : i32
    %5 = arith.cmpi eq, %arg1, %c0_i32_1 : i32
    %6 = arith.andi %4, %5 : i1
    %c0_i32_2 = arith.constant 0 : i32
    %7 = arith.cmpi eq, %arg2, %c0_i32_2 : i32
    %8 = arith.andi %6, %7 : i1
    %9 = arith.extui %8 : i1 to i32
    %c0_i32_3 = arith.constant 0 : i32
    %10 = arith.cmpi ne, %9, %c0_i32_3 : i32
    scf.if %10 {
      %c0_12 = arith.constant 0 : index
      %c0_13 = arith.constant 0 : index
      %24 = vector.load %arg4[%c0_12, %c0_13] : memref<256x128xbf16, #tpu.memory_space<vmem>>, vector<256x128xbf16>
      %c0_14 = arith.constant 0 : index
      %c0_15 = arith.constant 0 : index
      %25 = vector.load %arg8[%c0_14, %c0_15] : memref<256x128xbf16, #tpu.memory_space<vmem>>, vector<256x128xbf16>
      tpu.vector_store %arg8[%c0_14, %c0_15], %24 {strides = array<i32>} : memref<256x128xbf16, #tpu.memory_space<vmem>>, vector<256x128xbf16>,
      %cst_16 = arith.constant 0.000000e+00 : f32
      %26 = vector.broadcast %cst_16 : f32 to vector<256x128xf32>
      %c0_17 = arith.constant 0 : index
      %c0_18 = arith.constant 0 : index
      %27 = vector.load %arg10[%c0_17, %c0_18] : memref<256x128xf32, #tpu.memory_space<vmem>>, vector<256x128xf32>
      tpu.vector_store %arg10[%c0_17, %c0_18], %26 {strides = array<i32>} : memref<256x128xf32, #tpu.memory_space<vmem>>, vector<256x128xf32>,
    } else {
    }
    %c0 = arith.constant 0 : index
    %c0_4 = arith.constant 0 : index
    %11 = vector.load %arg3[%c0, %c0_4] : memref<256x256xbf16, #tpu.memory_space<vmem>>, vector<256x256xbf16>
    %12 = arith.index_cast %3 : i32 to index
    %c0_5 = arith.constant 0 : index
    %13 = vector.load %arg8[%12, %c0_5] : memref<256x128xbf16, #tpu.memory_space<vmem>>, vector<256x128xbf16>
    %cst = arith.constant dense<0.000000e+00> : vector<256x128xf32>
    %14 = tpu.matmul %11, %13, %cst {dimension_numbers = #tpu.dot_dimension_numbers<[1], [0], [0], [1], [0, 0, 1, 1], [], []>} : vector<256x256xbf16>, vector<256x128xbf16>, vector<256x128xf32> -> vector<256x128xf32>
    %c0_i32_6 = arith.constant 0 : i32
    %15 = arith.cmpi eq, %arg2, %c0_i32_6 : i32
    %16 = arith.extui %15 : i1 to i32
    %c0_i32_7 = arith.constant 0 : i32
    %17 = arith.cmpi ne, %16, %c0_i32_7 : i32
    scf.if %17 {
      %24 = arith.index_cast %1 : i32 to index
      %c0_12 = arith.constant 0 : index
      %25 = vector.load %arg9[%24, %c0_12] : memref<256x128xf32, #tpu.memory_space<vmem>>, vector<256x128xf32>
      tpu.vector_store %arg9[%24, %c0_12], %14 {strides = array<i32>} : memref<256x128xf32, #tpu.memory_space<vmem>>, vector<256x128xf32>,
    } else {
    }
    %c0_i32_8 = arith.constant 0 : i32
    %18 = arith.cmpi sgt, %arg2, %c0_i32_8 : i32
    %19 = arith.extui %18 : i1 to i32
    %c0_i32_9 = arith.constant 0 : i32
    %20 = arith.cmpi ne, %19, %c0_i32_9 : i32
    scf.if %20 {
      %24 = arith.index_cast %1 : i32 to index
      %c0_12 = arith.constant 0 : index
      %25 = vector.load %arg9[%24, %c0_12] : memref<256x128xf32, #tpu.memory_space<vmem>>, vector<256x128xf32>
      %26 = arith.addf %25, %14 : vector<256x128xf32>
      %27 = arith.index_cast %1 : i32 to index
      %c0_13 = arith.constant 0 : index
      %28 = vector.load %arg9[%27, %c0_13] : memref<256x128xf32, #tpu.memory_space<vmem>>, vector<256x128xf32>
      tpu.vector_store %arg9[%27, %c0_13], %26 {strides = array<i32>} : memref<256x128xf32, #tpu.memory_space<vmem>>, vector<256x128xf32>,
    } else {
    }
    %c0_i32_10 = arith.constant 0 : i32
    %21 = arith.cmpi eq, %arg2, %c0_i32_10 : i32
    %22 = arith.extui %21 : i1 to i32
    %c0_i32_11 = arith.constant 0 : i32
    %23 = arith.cmpi ne, %22, %c0_i32_11 : i32
    scf.if %23 {
      %24 = arith.index_cast %1 : i32 to index
      %c0_12 = arith.constant 0 : index
      %25 = vector.load %arg10[%24, %c0_12] : memref<256x128xf32, #tpu.memory_space<vmem>>, vector<256x128xf32>
      %26 = arith.index_cast %1 : i32 to index
      %c0_13 = arith.constant 0 : index
      %27 = vector.load %arg9[%26, %c0_13] : memref<256x128xf32, #tpu.memory_space<vmem>>, vector<256x128xf32>
      %28 = arith.addf %25, %27 : vector<256x128xf32>
      %29 = arith.index_cast %1 : i32 to index
      %c0_14 = arith.constant 0 : index
      %30 = vector.load %arg10[%29, %c0_14] : memref<256x128xf32, #tpu.memory_space<vmem>>, vector<256x128xf32>
      tpu.vector_store %arg10[%29, %c0_14], %28 {strides = array<i32>} : memref<256x128xf32, #tpu.memory_space<vmem>>, vector<256x128xf32>,
      %c2_i32 = arith.constant 2 : i32
      %31 = arith.cmpi eq, %arg0, %c2_i32 : i32
      %32 = arith.extui %31 : i1 to i32
      %c0_i32_15 = arith.constant 0 : i32
      %33 = arith.cmpi ne, %32, %c0_i32_15 : i32
      scf.if %33 {
        %39 = arith.index_cast %1 : i32 to index
        %c0_19 = arith.constant 0 : index
        %40 = vector.load %arg4[%39, %c0_19] : memref<256x128xbf16, #tpu.memory_space<vmem>>, vector<256x128xbf16>
        %41 = arith.extf %40 : vector<256x128xbf16> to vector<256x128xf32>
        %cst_20 = arith.constant 5.000000e-02 : f32
        %42 = vector.broadcast %cst_20 : f32 to vector<256x128xf32>
        %43 = arith.mulf %42, %41 : vector<256x128xf32>
        %44 = arith.index_cast %1 : i32 to index
        %c0_21 = arith.constant 0 : index
        %45 = vector.load %arg10[%44, %c0_21] : memref<256x128xf32, #tpu.memory_space<vmem>>, vector<256x128xf32>
        %cst_22 = arith.constant 0.316666663 : f32
        %46 = vector.broadcast %cst_22 : f32 to vector<256x128xf32>
        %47 = arith.mulf %46, %45 : vector<256x128xf32>
        %48 = arith.addf %43, %47 : vector<256x128xf32>
        %49 = arith.truncf %48 : vector<256x128xf32> to vector<256x128xbf16>
        %c0_23 = arith.constant 0 : index
        %c0_24 = arith.constant 0 : index
        %50 = vector.load %arg5[%c0_23, %c0_24] : memref<128x128xbf16, #tpu.memory_space<vmem>>, vector<128x128xbf16>
        %cst_25 = arith.constant dense<0.000000e+00> : vector<256x128xf32>
        %51 = tpu.matmul %49, %50, %cst_25 {dimension_numbers = #tpu.dot_dimension_numbers<[1], [0], [0], [1], [0, 0, 1, 1], [], []>} : vector<256x128xbf16>, vector<128x128xbf16>, vector<256x128xf32> -> vector<256x128xf32>
        %c0_26 = arith.constant 0 : index
        %c0_27 = arith.constant 0 : index
        %52 = vector.load %arg6[%c0_26, %c0_27] : memref<1x128xf32, #tpu.memory_space<vmem>>, vector<1x128xf32>
        %53 = vector.broadcast %52 : vector<1x128xf32> to vector<256x128xf32>
        %54 = arith.addf %51, %53 : vector<256x128xf32>
        %c0_28 = arith.constant 0 : index
        %c0_29 = arith.constant 0 : index
        %55 = vector.load %arg7[%c0_28, %c0_29] : memref<256x128xf32, #tpu.memory_space<vmem>>, vector<256x128xf32>
        tpu.vector_store %arg7[%c0_28, %c0_29], %54 {strides = array<i32>} : memref<256x128xf32, #tpu.memory_space<vmem>>, vector<256x128xf32>,
      } else {
      }
      %c0_i32_16 = arith.constant 0 : i32
      %34 = arith.cmpi eq, %arg1, %c0_i32_16 : i32
      %c2_i32_17 = arith.constant 2 : i32
      %35 = arith.cmpi slt, %arg0, %c2_i32_17 : i32
      %36 = arith.andi %34, %35 : i1
      %37 = arith.extui %36 : i1 to i32
      %c0_i32_18 = arith.constant 0 : i32
      %38 = arith.cmpi ne, %37, %c0_i32_18 : i32
      scf.if %38 {
        %c0_19 = arith.constant 0 : index
        %c0_20 = arith.constant 0 : index
        %39 = vector.load %arg9[%c0_19, %c0_20] : memref<256x128xf32, #tpu.memory_space<vmem>>, vector<256x128xf32>
        %40 = arith.truncf %39 : vector<256x128xf32> to vector<256x128xbf16>
        %c0_21 = arith.constant 0 : index
        %c0_22 = arith.constant 0 : index
        %41 = vector.load %arg8[%c0_21, %c0_22] : memref<256x128xbf16, #tpu.memory_space<vmem>>, vector<256x128xbf16>
        tpu.vector_store %arg8[%c0_21, %c0_22], %40 {strides = array<i32>} : memref<256x128xbf16, #tpu.memory_space<vmem>>, vector<256x128xbf16>,
      } else {
      }
    } else {
    }
    return
  }
  func.func @transform_0(%arg0: i32, %arg1: i32, %arg2: i32) -> (i32, i32) {
    %c0_i32 = arith.constant 0 : i32
    return %arg1, %arg2 : i32, i32
  }
  func.func @transform_1(%arg0: i32, %arg1: i32, %arg2: i32) -> (i32, i32) {
    %c0_i32 = arith.constant 0 : i32
    %c0_i32_0 = arith.constant 0 : i32
    %c0_i32_1 = arith.constant 0 : i32
    return %c0_i32, %c0_i32_0 : i32, i32
  }
  func.func @transform_2(%arg0: i32, %arg1: i32, %arg2: i32) -> (i32, i32) {
    %c0_i32 = arith.constant 0 : i32
    %c0_i32_0 = arith.constant 0 : i32
    %c0_i32_1 = arith.constant 0 : i32
    return %c0_i32, %c0_i32_0 : i32, i32
  }
  func.func @transform_3(%arg0: i32, %arg1: i32, %arg2: i32) -> (i32, i32) {
    %c0_i32 = arith.constant 0 : i32
    %c0_i32_0 = arith.constant 0 : i32
    %c0_i32_1 = arith.constant 0 : i32
    return %c0_i32, %c0_i32_0 : i32, i32
  }
  func.func @transform_4(%arg0: i32, %arg1: i32, %arg2: i32) -> (i32, i32) {
    %c0_i32 = arith.constant 0 : i32
    %c0_i32_0 = arith.constant 0 : i32
    return %arg1, %c0_i32 : i32, i32
  }
}

</mosaic_0001>

<bundles_post_ra>
// kernel: tpu_custom_call.1
= control target key start
LH: loop header
LB: loop body
LE: loop exit
PB: predicated region body
PF: predicated region fallthrough
CT: control target
= control target key end

     0   :  { %9 = vsyncpa [#allocation6], 0  ;;  %s2662_s0 = inlined_call_operand.hbm [shape: bf16[256,256], index: 0, kind: input, shape index: {}]   ;;  %s2663_s1 = inlined_call_operand.hbm [shape: bf16[256,128], index: 1, kind: input, shape index: {}]   ;;  %s2664_s2 = inlined_call_operand.hbm [shape: bf16[128,128], index: 2, kind: input, shape index: {}]   ;;  %s2665_s3 = inlined_call_operand.vmem [shape: f32[1,128], index: 3, kind: input, shape index: {}]   ;;  %s2666_s4 = inlined_call_operand.hbm [shape: f32[256,128], index: 4, kind: output, shape index: {}]  }
   0x1   :  { %10 = vsyncpa [#allocation9], 0 }
   0x2   :  { %11 = vsyncpa [#allocation7], 0  ;;  %s2424_s15 = smov 0   ;;  %s2426_s16 = smov 0  }
   0x3   :  { %s2428_s17 = smov 0  }
   0x4 LB: > { %s2388_s18 = smov [#allocation8]   ;;  %s1729_s20 = sadd.s32 4294967295, %s2386_s17   ;;  %s2386_s17 = sphi %s2428_s17, %s17_s17   ;;  %s2382_s16 = sphi %s2426_s16, %s2679_s16   ;;  %s2378_s15 = sphi %s2424_s15, %s2678_s15  }
   0x5   : > { %s189_s19 = sshll.u32 %s2388_s18, 4  ;;  %p1730_p0 = scmp.ge.s32.totalorder %s2386_s17, 1  ;;  %s2448_s19 = int_to_ptr.vmem [resolvable:$true] %s189_s19 }
   0x6   : > { %p158_p1 = scmp.lt.s32.totalorder %s2386_s17, 4  ;;  %p2444_p2 = scmp.eq.s32.totalorder %s1729_s20, 0 }
   0x7   : > { %s36_s24 = sadd.s32 1, %s2382_s16  ;;  %s2389_s26 = smov [#allocation5]  }
   0x8   : > { %s2670_s21 = scalar_select %p2444_p2, 1, 0 }
   0x9   : > { %p2450_p3 = pnand %p1730_p0, %p158_p1  ;;  %p2463_p6 = scmp.ge.s32.totalorder %s36_s24, 3 }
   0xa   : > { %s176_s27 = sshll.u32 %s2389_s26, 4  ;;  %s2242_s30 = scalar_lea.hbm %s2663_s1, 2048  ;;  %s177_s27 = int_to_ptr.vmem [resolvable:$true] %s176_s27 }
   0xb   : > { %s2671_s22 = scalar_select %p2450_p3, 1, 0 }
   0xc   : > { %p2117_p4 = pneg %p2450_p3  ;;  %p2243_p7 = scmp.ne.s32.totalorder %s2663_s1, %s2242_s30 }
   0xd   : > { %p2249_p11 = scmp.lt.u32.totalorder %s2242_s30, %s2663_s1 }
   0xe   : > { %p2458_p5 = pnand %p2444_p2, %p2117_p4 }
  0x10   : > { %p2475_p8 = pneg %p2458_p5 }
  0x12   : > { %p2245_p9 = pnand %p2475_p8, %p2243_p7 }
  0x14   : > { %p2246_p10 = pneg %p2245_p9 }
  0x16   : > { %p2251_p12 = pnand %p2249_p11, %p2246_p10 }
  0x18   : > { %2254 = shalt.err (!%p2251_p12)
}
  0x19   : > { %s2255_s10 = scalar_lea.vmem %s2448_s19, 2048  ;;  %p2263_p4 = scmp.lt.s32.totalorder %s2448_s19, %s2448_s19 }
  0x1a   : > { %p2256_p13 = scmp.ne.s32.totalorder %s2448_s19, %s2255_s10  ;;  %p2264_p2 = scmp.lt.s32.totalorder %s2255_s10, %s2255_s10 }
  0x1c   : > { %p2258_p0 = pnand %p2256_p13, %p2475_p8  ;;  %p2265_p7 = por %p2264_p2, %p2263_p4 }
  0x1e   : > { %p2259_p1 = pneg %p2258_p0 }
  0x20   : > { %p2266_p9 = pnand %p2265_p7, %p2259_p1 }
  0x22   : > { %2269 = shalt.err (!%p2266_p9)
}
  0x23   : > { %s2390_s11 = smov 64   ;;  %s2391_s12 = smov 4  }
  0x24   : > { %2123 = dma.hbm_to_vmem [thread:$0]  (!%p2458_p5), %s2663_s1, 2048, %s2448_s19, [#allocation9], %s2390_s11, %s2390_s11, %s2391_s12  }
  0x25   : > { %s2681_s24 = smov (%p2463_p6, %s36_s24), 0  ;;  %s2270_s28 = scalar_lea.hbm %s2662_s0, 4096 }
  0x26   : > { %p2271_p2 = scmp.ne.s32.totalorder %s2662_s0, %s2270_s28  ;;  %p2277_p12 = scmp.lt.u32.totalorder %s2270_s28, %s2662_s0 }
  0x28   : > { %p2273_p10 = pnand %p2271_p2, %p2475_p8 }
  0x2a   : > { %p2274_p11 = pneg %p2273_p10 }
  0x2c   : > { %p2279_p13 = pnand %p2277_p12, %p2274_p11 }
  0x2e   : > { %2282 = shalt.err (!%p2279_p13)
}
  0x2f   : > { %s2283_s19 = scalar_lea.vmem %s177_s27, 4096  ;;  %p2291_p4 = scmp.lt.s32.totalorder %s177_s27, %s177_s27 }
  0x30   : > { %p2284_p6 = scmp.ne.s32.totalorder %s177_s27, %s2283_s19  ;;  %p2292_p7 = scmp.lt.s32.totalorder %s2283_s19, %s2283_s19 }
  0x32   : > { %p2286_p0 = pnand %p2284_p6, %p2475_p8  ;;  %p2293_p9 = por %p2292_p7, %p2291_p4 }
  0x34   : > { %p2287_p1 = pneg %p2286_p0 }
  0x36   : > { %p2294_p3 = pnand %p2293_p9, %p2287_p1 }
  0x38   : > { %2297 = shalt.err (!%p2294_p3)
}
  0x39   : > { %s2392_s25 = smov 128   ;;  %s2393_s8 = smov 8  }
  0x3a   : > { %2120 = dma.hbm_to_vmem [thread:$0]  (!%p2458_p5), %s2662_s0, 4096, %s177_s27, [#allocation6], %s2392_s25, %s2392_s25, %s2393_s8  }
  0x3b   : > { %s2394_s13 = smov [#allocation10]   ;;  %s2298_s28 = scalar_lea.hbm %s2664_s2, 1024 }
  0x3c   : > { %s202_s14 = sshll.u32 %s2394_s13, 4  ;;  %p2299_p3 = scmp.ne.s32.totalorder %s2664_s2, %s2298_s28  ;;  %s203_s14 = int_to_ptr.vmem [resolvable:$true] %s202_s14 }
  0x3d   : > { %p2305_p11 = scmp.lt.u32.totalorder %s2298_s28, %s2664_s2 }
  0x3e   : > { %p2301_p2 = pnand %p2299_p3, %p2475_p8 }
  0x40   : > { %p2302_p10 = pneg %p2301_p2 }
  0x42   : > { %p2307_p12 = pnand %p2305_p11, %p2302_p10 }
  0x44   : > { %2310 = shalt.err (!%p2307_p12)
}
  0x45   : > { %s2311_s27 = scalar_lea.vmem %s203_s14, 1024  ;;  %p2319_p1 = scmp.lt.s32.totalorder %s203_s14, %s203_s14 }
  0x46   : > { %p2312_p13 = scmp.ne.s32.totalorder %s203_s14, %s2311_s27  ;;  %p2320_p4 = scmp.lt.s32.totalorder %s2311_s27, %s2311_s27 }
  0x48   : > { %p2314_p6 = pnand %p2312_p13, %p2475_p8  ;;  %p2321_p7 = por %p2320_p4, %p2319_p1 }
  0x4a   : > { %p2315_p0 = pneg %p2314_p6 }
  0x4c   : > { %p2322_p9 = pnand %p2321_p7, %p2315_p0 }
  0x4e   : > { %2325 = shalt.err (!%p2322_p9)
}
  0x4f   : > { %2126 = dma.hbm_to_vmem [thread:$0]  (!%p2458_p5), %s2664_s2, 1024, %s203_s14, [#allocation9], %s2390_s11, %s2390_s11, %s2391_s12  }
  0x50   : > { %p2675_p3 = scmp.ne.s32.totalorder %s2671_s22, 0 }
  0x51   : > { %p2676_p8 = scmp.ne.s32.totalorder (!%p2675_p3), %s2670_s21, 0 }
  0x52   : > { %221 = sbr.rel (%p2675_p3) target bundleno = 722 (0x2d2), region = 36 }
  0x59   : > { %2365 = dma.done.wait (%p2676_p8), [#allocation6], 4096  }
  0x5a   : > { %2367 = vsyncadd (%p2676_p8), [#allocation6], 4294963200 }
  0x5b   : > { %2369 = dma.done.wait (%p2676_p8), [#allocation9], 3072  }
  0x5c   : > { %2371 = vsyncadd (%p2676_p8), [#allocation9], 4294964224  ;;  %p251_p2 = scmp.eq.s32.totalorder %s2378_s15, 0 }
  0x5d   : > { %v2170_v0 = vld [vmem:[#allocation8] sm:$0xff] (%p251_p2)   ;;  %v2171_v1 = vld [vmem:[#allocation8 + $0x8] sm:$0xff] (%p251_p2)   ;;  %v2395_v2 = vmov (%p251_p2), 0.0   ;;  %v2172_v3 = vld [vmem:[#allocation8 + $0x10] sm:$0xff] (%p251_p2)  }
  0x5e   : > { %259 = sbr.rel (!%p251_p2) target bundleno = 118 (0x76), region = 52  ;;  %404 = vst [vmem:[#allocation4] sm:$0xff] (%p251_p2), %v2395_v2  ;;  %405 = vst [vmem:[#allocation4 + $0x8] sm:$0xff] (%p251_p2), %v2395_v2  ;;  %v2173_v4 = vld [vmem:[#allocation8 + $0x18] sm:$0xff] (%p251_p2)   ;;  %v2174_v5 = vld [vmem:[#allocation8 + $0x20] sm:$0xff] (%p251_p2)  }
  0x5f   : > { %406 = vst [vmem:[#allocation4 + $0x10] sm:$0xff] (%p251_p2), %v2395_v2  ;;  %407 = vst [vmem:[#allocation4 + $0x18] sm:$0xff] (%p251_p2), %v2395_v2  ;;  %v2175_v6 = vld [vmem:[#allocation8 + $0x28] sm:$0xff] (%p251_p2)   ;;  %v2176_v7 = vld [vmem:[#allocation8 + $0x30] sm:$0xff] (%p251_p2)  }
  0x60   : > { %408 = vst [vmem:[#allocation4 + $0x20] sm:$0xff] (%p251_p2), %v2395_v2  ;;  %409 = vst [vmem:[#allocation4 + $0x28] sm:$0xff] (%p251_p2), %v2395_v2  ;;  %v2177_v8 = vld [vmem:[#allocation8 + $0x38] sm:$0xff] (%p251_p2)   ;;  %v2178_v9 = vld [vmem:[#allocation8 + $0x40] sm:$0xff] (%p251_p2)  }
  0x61   : > { %410 = vst [vmem:[#allocation4 + $0x30] sm:$0xff] (%p251_p2), %v2395_v2  ;;  %411 = vst [vmem:[#allocation4 + $0x38] sm:$0xff] (%p251_p2), %v2395_v2  ;;  %v2179_v10 = vld [vmem:[#allocation8 + $0x48] sm:$0xff] (%p251_p2)   ;;  %v2180_v11 = vld [vmem:[#allocation8 + $0x50] sm:$0xff] (%p251_p2)  }
  0x62   : > { %412 = vst [vmem:[#allocation4 + $0x40] sm:$0xff] (%p251_p2), %v2395_v2  ;;  %413 = vst [vmem:[#allocation4 + $0x48] sm:$0xff] (%p251_p2), %v2395_v2  ;;  %v2181_v12 = vld [vmem:[#allocation8 + $0x58] sm:$0xff] (%p251_p2)   ;;  %v2182_v13 = vld [vmem:[#allocation8 + $0x60] sm:$0xff] (%p251_p2)  }
  0x63   : > { %414 = vst [vmem:[#allocation4 + $0x50] sm:$0xff] (%p251_p2), %v2395_v2  ;;  %415 = vst [vmem:[#allocation4 + $0x58] sm:$0xff] (%p251_p2), %v2395_v2  ;;  %v2183_v14 = vld [vmem:[#allocation8 + $0x68] sm:$0xff] (%p251_p2)   ;;  %v2184_v15 = vld [vmem:[#allocation8 + $0x70] sm:$0xff] (%p251_p2)  }
  0x64   : > { %416 = vst [vmem:[#allocation4 + $0x60] sm:$0xff] (%p251_p2), %v2395_v2  ;;  %417 = vst [vmem:[#allocation4 + $0x68] sm:$0xff] (%p251_p2), %v2395_v2  ;;  %v2185_v16 = vld [vmem:[#allocation8 + $0x78] sm:$0xff] (%p251_p2)  }
  0x65   : > { %418 = vst [vmem:[#allocation4 + $0x70] sm:$0xff] %v2395_v2  ;;  %419 = vst [vmem:[#allocation4 + $0x78] sm:$0xff] %v2395_v2 }
  0x66   : > { %420 = vst [vmem:[#allocation4 + $0x80] sm:$0xff] %v2395_v2  ;;  %421 = vst [vmem:[#allocation4 + $0x88] sm:$0xff] %v2395_v2 }
  0x67   : > { %422 = vst [vmem:[#allocation4 + $0x90] sm:$0xff] %v2395_v2  ;;  %423 = vst [vmem:[#allocation4 + $0x98] sm:$0xff] %v2395_v2 }
  0x68   : > { %424 = vst [vmem:[#allocation4 + $0xa0] sm:$0xff] %v2395_v2  ;;  %425 = vst [vmem:[#allocation4 + $0xa8] sm:$0xff] %v2395_v2 }
  0x69   : > { %426 = vst [vmem:[#allocation4 + $0xb0] sm:$0xff] %v2395_v2  ;;  %427 = vst [vmem:[#allocation4 + $0xb8] sm:$0xff] %v2395_v2 }
  0x6a   : > { %428 = vst [vmem:[#allocation4 + $0xc0] sm:$0xff] %v2395_v2  ;;  %429 = vst [vmem:[#allocation4 + $0xc8] sm:$0xff] %v2395_v2 }
  0x6b   : > { %430 = vst [vmem:[#allocation4 + $0xd0] sm:$0xff] %v2395_v2  ;;  %431 = vst [vmem:[#allocation4 + $0xd8] sm:$0xff] %v2395_v2 }
  0x6c   : > { %432 = vst [vmem:[#allocation4 + $0xe0] sm:$0xff] %v2395_v2  ;;  %433 = vst [vmem:[#allocation4 + $0xe8] sm:$0xff] %v2395_v2 }
  0x6d   : > { %434 = vst [vmem:[#allocation4 + $0xf0] sm:$0xff] %v2395_v2  ;;  %435 = vst [vmem:[#allocation4 + $0xf8] sm:$0xff] %v2395_v2 }
  0x6e   : > { %388 = vst [vmem:[#allocation2] sm:$0xff] %v2170_v0  ;;  %389 = vst [vmem:[#allocation2 + $0x8] sm:$0xff] %v2171_v1 }
  0x6f   : > { %390 = vst [vmem:[#allocation2 + $0x10] sm:$0xff] %v2172_v3  ;;  %391 = vst [vmem:[#allocation2 + $0x18] sm:$0xff] %v2173_v4 }
  0x70   : > { %392 = vst [vmem:[#allocation2 + $0x20] sm:$0xff] %v2174_v5  ;;  %393 = vst [vmem:[#allocation2 + $0x28] sm:$0xff] %v2175_v6 }
  0x71   : > { %394 = vst [vmem:[#allocation2 + $0x30] sm:$0xff] %v2176_v7  ;;  %395 = vst [vmem:[#allocation2 + $0x38] sm:$0xff] %v2177_v8 }
  0x72   : > { %396 = vst [vmem:[#allocation2 + $0x40] sm:$0xff] %v2178_v9  ;;  %397 = vst [vmem:[#allocation2 + $0x48] sm:$0xff] %v2179_v10 }
  0x73   : > { %398 = vst [vmem:[#allocation2 + $0x50] sm:$0xff] %v2180_v11  ;;  %399 = vst [vmem:[#allocation2 + $0x58] sm:$0xff] %v2181_v12 }
  0x74   : > { %400 = vst [vmem:[#allocation2 + $0x60] sm:$0xff] %v2182_v13  ;;  %401 = vst [vmem:[#allocation2 + $0x68] sm:$0xff] %v2183_v14 }
  0x75   : > { %402 = vst [vmem:[#allocation2 + $0x70] sm:$0xff] %v2184_v15  ;;  %403 = vst [vmem:[#allocation2 + $0x78] sm:$0xff] %v2185_v16 }
  0x76 PF: > { %v472_v18 = vld [vmem:[#allocation2] sm:$0xff]  ;;  %v473_v20 = vld [vmem:[#allocation2 + $0x8] sm:$0xff]  ;;  %v474_v23 = vld [vmem:[#allocation2 + $0x10] sm:$0xff]  ;;  %p1788_p5 = scmp.ne.s32.totalorder %s2378_s15, 2 }
  0x77   : > { %v2188_v22 = vld [vmem:[#allocation5 + $0x4] ss:$8 sps:$4 sm:$0xff]   ;;  %v475_v26 = vld [vmem:[#allocation2 + $0x18] sm:$0xff]  ;;  %v2186_v35 = vld [vmem:[#allocation5] ss:$8 sps:$4 sm:$0xff]  }
  0x78   : > { %v2191_v24 = vld [vmem:[#allocation5 + $0x84] ss:$8 sps:$4 sm:$0xff]   ;;  %680 = vmatprep.mubr.bf16.mxu0 %v2188_v22  ;;  %v478_v32 = vld [vmem:[#allocation2 + $0x30] sm:$0xff]  ;;  %v479_v34 = vld [vmem:[#allocation2 + $0x38] sm:$0xff] }
  0x79   : > { %v480_v17 = vld [vmem:[#allocation2 + $0x40] sm:$0xff]  ;;  %v481_v19 = vld [vmem:[#allocation2 + $0x48] sm:$0xff]  ;;  %744 = vmatprep.mubr.bf16.mxu1 %v2191_v24  ;;  %v2192_v37 = vld [vmem:[#allocation5 + $0x14] ss:$8 sps:$4 sm:$0xff]  }
  0x7a   : > { %1885 = vmatprep.subr.bf16.mxu0 %v480_v17  ;;  %2069 = vmatprep.subr.bf16.mxu1 %v480_v17  ;;  %v482_v21 = vld [vmem:[#allocation2 + $0x50] sm:$0xff]  ;;  %v483_v25 = vld [vmem:[#allocation2 + $0x58] sm:$0xff]  ;;  %v476_v28 = vld [vmem:[#allocation2 + $0x20] sm:$0xff] }
  0x7b   : > { %1886 = vmatpush3.bf16.msra.mxu0 %v472_v18  ;;  %2077 = vmatpush3.bf16.msra.mxu1 %v472_v18  ;;  %v484_v27 = vld [vmem:[#allocation2 + $0x60] sm:$0xff]  ;;  %v485_v29 = vld [vmem:[#allocation2 + $0x68] sm:$0xff]  ;;  %v2194_v38 = vld [vmem:[#allocation5 + $0x94] ss:$8 sps:$4 sm:$0xff]  }
  0x7c   : > { %1887 = vmatprep.subr.bf16.mxu0 %v481_v19  ;;  %2070 = vmatprep.subr.bf16.mxu1 %v481_v19  ;;  %v477_v30 = vld [vmem:[#allocation2 + $0x28] sm:$0xff]  ;;  %v486_v31 = vld [vmem:[#allocation2 + $0x70] sm:$0xff]  ;;  %v487_v33 = vld [vmem:[#allocation2 + $0x78] sm:$0xff] }
  0x7d   : > { %v2189_v36 = vld [vmem:[#allocation5 + $0x80] ss:$8 sps:$4 sm:$0xff]   ;;  %v2196_v39 = vld [vmem:[#allocation5 + $0x10] ss:$8 sps:$4 sm:$0xff]   ;;  %v2198_v41 = vld [vmem:[#allocation5 + $0x24] ss:$8 sps:$4 sm:$0xff]  }
  0x7e   : > { %v2197_v40 = vld [vmem:[#allocation5 + $0x90] ss:$8 sps:$4 sm:$0xff]   ;;  %v2200_v42 = vld [vmem:[#allocation5 + $0xa4] ss:$8 sps:$4 sm:$0xff]   ;;  %v2202_v43 = vld [vmem:[#allocation5 + $0x20] ss:$8 sps:$4 sm:$0xff]  }
  0x7f   : > { %1888 = vmatpush3.bf16.msra.mxu0 %v473_v20  ;;  %2078 = vmatpush3.bf16.msra.mxu1 %v473_v20  ;;  %v2203_v44 = vld [vmem:[#allocation5 + $0xa0] ss:$8 sps:$4 sm:$0xff]   ;;  %v2204_v45 = vld [vmem:[#allocation5 + $0x34] ss:$8 sps:$4 sm:$0xff]   ;;  %v2208_v47 = vld [vmem:[#allocation5 + $0x30] ss:$8 sps:$4 sm:$0xff]  }
  0x80   : > { %1889 = vmatprep.subr.bf16.mxu0 %v482_v21  ;;  %2071 = vmatprep.subr.bf16.mxu1 %v482_v21  ;;  %v2206_v46 = vld [vmem:[#allocation5 + $0xb4] ss:$8 sps:$4 sm:$0xff]   ;;  %v2209_v48 = vld [vmem:[#allocation5 + $0xb0] ss:$8 sps:$4 sm:$0xff]   ;;  %v2210_v49 = vld [vmem:[#allocation5 + $0x44] ss:$8 sps:$4 sm:$0xff]  }
  0x81   : > { %v2212_v50 = vld [vmem:[#allocation5 + $0xc4] ss:$8 sps:$4 sm:$0xff]   ;;  %v2214_v51 = vld [vmem:[#allocation5 + $0x40] ss:$8 sps:$4 sm:$0xff]   ;;  %v2216_v53 = vld [vmem:[#allocation5 + $0x54] ss:$8 sps:$4 sm:$0xff]  }
  0x82   : > { %v2215_v52 = vld [vmem:[#allocation5 + $0xc0] ss:$8 sps:$4 sm:$0xff]   ;;  %v2218_v54 = vld [vmem:[#allocation5 + $0xd4] ss:$8 sps:$4 sm:$0xff]   ;;  %v2220_v55 = vld [vmem:[#allocation5 + $0x50] ss:$8 sps:$4 sm:$0xff]  }
  0x83   : > { %1890 = vmatpush3.bf16.msra.mxu0 %v474_v23  ;;  %2079 = vmatpush3.bf16.msra.mxu1 %v474_v23  ;;  %v2221_v56 = vld [vmem:[#allocation5 + $0xd0] ss:$8 sps:$4 sm:$0xff]   ;;  %v2222_v57 = vld [vmem:[#allocation5 + $0x64] ss:$8 sps:$4 sm:$0xff]   ;;  %v2226_v59 = vld [vmem:[#allocation5 + $0x60] ss:$8 sps:$4 sm:$0xff]  }
  0x84   : > { %1891 = vmatprep.subr.bf16.mxu0 %v483_v25  ;;  %2072 = vmatprep.subr.bf16.mxu1 %v483_v25  ;;  %v2224_v58 = vld [vmem:[#allocation5 + $0xe4] ss:$8 sps:$4 sm:$0xff]   ;;  %v2227_v60 = vld [vmem:[#allocation5 + $0xe0] ss:$8 sps:$4 sm:$0xff]   ;;  %v2228_v61 = vld [vmem:[#allocation5 + $0x74] ss:$8 sps:$4 sm:$0xff]  }
  0x85   : > { %v2230_v62 = vld [vmem:[#allocation5 + $0xf4] ss:$8 sps:$4 sm:$0xff]   ;;  %v2232_v63 = vld [vmem:[#allocation5 + $0x70] ss:$8 sps:$4 sm:$0xff]   ;;  %v950_v4 = vld [vmem:[#allocation4] sm:$0xff] }
  0x86   : > { %v2233_v0 = vld [vmem:[#allocation5 + $0xf0] ss:$8 sps:$4 sm:$0xff]   ;;  %v966_v6 = vld [vmem:[#allocation4 + $0x80] sm:$0xff]  ;;  %v951_v12 = vld [vmem:[#allocation4 + $0x8] sm:$0xff] }
  0x87   : > { %1892 = vmatpush3.bf16.msra.mxu0 %v475_v26  ;;  %2080 = vmatpush3.bf16.msra.mxu1 %v475_v26  ;;  %v967_v14 = vld [vmem:[#allocation4 + $0x88] sm:$0xff]  ;;  %v952_v24 = vld [vmem:[#allocation4 + $0x10] sm:$0xff] }
  0x88   : > { %1893 = vmatprep.subr.bf16.mxu0 %v484_v27  ;;  %2073 = vmatprep.subr.bf16.mxu1 %v484_v27  ;;  %v968_v26 = vld [vmem:[#allocation4 + $0x90] sm:$0xff] }
  0x8b   : > { %1894 = vmatpush3.bf16.msra.mxu0 %v476_v28  ;;  %2081 = vmatpush3.bf16.msra.mxu1 %v476_v28 }
  0x8c   : > { %1895 = vmatprep.subr.bf16.mxu0 %v485_v29  ;;  %2074 = vmatprep.subr.bf16.mxu1 %v485_v29 }
  0x8f   : > { %1896 = vmatpush3.bf16.msra.mxu0 %v477_v30  ;;  %2082 = vmatpush3.bf16.msra.mxu1 %v477_v30 }
  0x90   : > { %1897 = vmatprep.subr.bf16.mxu0 %v486_v31  ;;  %2075 = vmatprep.subr.bf16.mxu1 %v486_v31 }
  0x93   : > { %1898 = vmatpush3.bf16.msra.mxu0 %v478_v32  ;;  %2083 = vmatpush3.bf16.msra.mxu1 %v478_v32  ;;  %v953_v32 = vld [vmem:[#allocation4 + $0x18] sm:$0xff] }
  0x94   : > { %1899 = vmatprep.subr.bf16.mxu0 %v487_v33  ;;  %2076 = vmatprep.subr.bf16.mxu1 %v487_v33 }
  0x97   : > { %1900 = vmatpush3.bf16.msra.mxu0 %v479_v34  ;;  %2084 = vmatpush3.bf16.msra.mxu1 %v479_v34  ;;  %v969_v34 = vld [vmem:[#allocation4 + $0x98] sm:$0xff] }
  0x9a   : > { %681 = vmatmul.mubr.bf16.vlgmr.msra.gmra.mrb[0].mxu0 %v2186_v35  ;;  %745 = vmatmul.mubr.bf16.vlgmr.msra.gmra.mrb[0].mxu1 %v2189_v36 }
  0x9b   : > { %688 = vmatprep.mubr.bf16.mxu0 %v2192_v37  ;;  %752 = vmatprep.mubr.bf16.mxu1 %v2194_v38 }
  0xa2   : > { %689 = vmatmul.mubr.bf16.gmra.mrb[4].mxu0 %v2196_v39  ;;  %753 = vmatmul.mubr.bf16.gmra.mrb[4].mxu1 %v2197_v40 }
  0xa3   : > { %696 = vmatprep.mubr.bf16.mxu0 %v2198_v41  ;;  %760 = vmatprep.mubr.bf16.mxu1 %v2200_v42 }
  0xaa   : > { %697 = vmatmul.mubr.bf16.gmra.mrb[8].mxu0 %v2202_v43  ;;  %761 = vmatmul.mubr.bf16.gmra.mrb[8].mxu1 %v2203_v44  ;;  %v954_v44 = vld [vmem:[#allocation4 + $0x20] sm:$0xff] }
  0xab   : > { %704 = vmatprep.mubr.bf16.mxu0 %v2204_v45  ;;  %768 = vmatprep.mubr.bf16.mxu1 %v2206_v46  ;;  %v970_v46 = vld [vmem:[#allocation4 + $0xa0] sm:$0xff] }
  0xb2   : > { %705 = vmatmul.mubr.bf16.gmra.mrb[12].mxu0 %v2208_v47  ;;  %769 = vmatmul.mubr.bf16.gmra.mrb[12].mxu1 %v2209_v48 }
  0xb3   : > { %712 = vmatprep.mubr.bf16.mxu0 %v2210_v49  ;;  %776 = vmatprep.mubr.bf16.mxu1 %v2212_v50 }
  0xba   : > { %713 = vmatmul.mubr.bf16.gmra.mrb[16].mxu0 %v2214_v51  ;;  %777 = vmatmul.mubr.bf16.gmra.mrb[16].mxu1 %v2215_v52  ;;  %v955_v52 = vld [vmem:[#allocation4 + $0x28] sm:$0xff] }
  0xbb   : > { %720 = vmatprep.mubr.bf16.mxu0 %v2216_v53  ;;  %784 = vmatprep.mubr.bf16.mxu1 %v2218_v54  ;;  %v971_v54 = vld [vmem:[#allocation4 + $0xa8] sm:$0xff] }
  0xc2   : > { %721 = vmatmul.mubr.bf16.gmra.mrb[20].mxu0 %v2220_v55  ;;  %785 = vmatmul.mubr.bf16.gmra.mrb[20].mxu1 %v2221_v56 }
  0xc3   : > { %728 = vmatprep.mubr.bf16.mxu0 %v2222_v57  ;;  %792 = vmatprep.mubr.bf16.mxu1 %v2224_v58 }
  0xca   : > { %729 = vmatmul.mubr.bf16.gmra.mrb[24].mxu0 %v2226_v59  ;;  %793 = vmatmul.mubr.bf16.gmra.mrb[24].mxu1 %v2227_v60 }
  0xcb   : > { %736 = vmatprep.mubr.bf16.mxu0 %v2228_v61  ;;  %800 = vmatprep.mubr.bf16.mxu1 %v2230_v62 }
  0xd2   : > { %737 = vmatmul.mubr.bf16.gmra.mrb[28].mxu0 %v2232_v63  ;;  %801 = vmatmul.mubr.bf16.gmra.mrb[28].mxu1 %v2233_v0  ;;  %v956_v0 = vld [vmem:[#allocation4 + $0x30] sm:$0xff] }
 0x16d   : > { %v1901_v1 = vpop.f32.mrb[0].mxu0  ;;  %v1949_v2 = vpop.f32.mrb[0].mxu1 }
 0x16e   : > { %v1902_v3 = vpop.f32.mrb[1].mxu0  ;;  %v1950_v5 = vpop.f32.mrb[1].mxu1 }
 0x16f   : > { %v1903_v7 = vadd.f32 %v1902_v3, %v1901_v1  ;;  %v1951_v8 = vadd.f32 %v1950_v5, %v1949_v2  ;;  %v1904_v9 = vpop.f32.mrb[2].mxu0  ;;  %v1952_v10 = vpop.f32.mrb[2].mxu1  ;;  %v972_v2 = vld [vmem:[#allocation4 + $0xb0] sm:$0xff] }
 0x170   : > { %v1905_v11 = vpop.f32.mrb[3].mxu0  ;;  %v1953_v13 = vpop.f32.mrb[3].mxu1 }
 0x171   : > { %813 = vst [vmem:[#allocation3] sm:$0xff] %v1903_v7  ;;  %v1015_v15 = vadd.f32 %v1903_v7, %v950_v4  ;;  %829 = vst [vmem:[#allocation3 + $0x80] sm:$0xff] %v1951_v8  ;;  %v1031_v16 = vadd.f32 %v1951_v8, %v966_v6  ;;  %v1906_v17 = vadd.f32 %v1905_v11, %v1904_v9  ;;  %v957_v8 = vld [vmem:[#allocation4 + $0x38] sm:$0xff] }
 0x172   : > { %v1954_v18 = vadd.f32 %v1953_v13, %v1952_v10  ;;  %v973_v10 = vld [vmem:[#allocation4 + $0xb8] sm:$0xff] }
 0x173   : > { %1047 = vst [vmem:[#allocation4] sm:$0xff] %v1015_v15  ;;  %1063 = vst [vmem:[#allocation4 + $0x80] sm:$0xff] %v1031_v16  ;;  %v1016_v19 = vadd.f32 %v1906_v17, %v951_v12 }
 0x174   : > { %814 = vst [vmem:[#allocation3 + $0x8] sm:$0xff] %v1906_v17  ;;  %830 = vst [vmem:[#allocation3 + $0x88] sm:$0xff] %v1954_v18  ;;  %v1032_v20 = vadd.f32 %v1954_v18, %v967_v14 }
 0x175   : > { %1048 = vst [vmem:[#allocation4 + $0x8] sm:$0xff] %v1016_v19  ;;  %v1907_v21 = vpop.f32.mrb[4].mxu0  ;;  %v1955_v22 = vpop.f32.mrb[4].mxu1 }
 0x176   : > { %1064 = vst [vmem:[#allocation4 + $0x88] sm:$0xff] %v1032_v20  ;;  %v1908_v23 = vpop.f32.mrb[5].mxu0  ;;  %v1956_v25 = vpop.f32.mrb[5].mxu1  ;;  %v958_v20 = vld [vmem:[#allocation4 + $0x40] sm:$0xff] }
 0x177   : > { %v1909_v27 = vadd.f32 %v1908_v23, %v1907_v21  ;;  %v1957_v28 = vadd.f32 %v1956_v25, %v1955_v22  ;;  %v1910_v29 = vpop.f32.mrb[6].mxu0  ;;  %v1958_v30 = vpop.f32.mrb[6].mxu1  ;;  %v974_v22 = vld [vmem:[#allocation4 + $0xc0] sm:$0xff] }
 0x178   : > { %v1911_v31 = vpop.f32.mrb[7].mxu0  ;;  %v1959_v33 = vpop.f32.mrb[7].mxu1 }
 0x179   : > { %815 = vst [vmem:[#allocation3 + $0x10] sm:$0xff] %v1909_v27  ;;  %v1017_v35 = vadd.f32 %v1909_v27, %v952_v24  ;;  %831 = vst [vmem:[#allocation3 + $0x90] sm:$0xff] %v1957_v28  ;;  %v1033_v36 = vadd.f32 %v1957_v28, %v968_v26  ;;  %v1912_v37 = vadd.f32 %v1911_v31, %v1910_v29  ;;  %v959_v28 = vld [vmem:[#allocation4 + $0x48] sm:$0xff] }
 0x17a   : > { %v1960_v38 = vadd.f32 %v1959_v33, %v1958_v30  ;;  %v975_v30 = vld [vmem:[#allocation4 + $0xc8] sm:$0xff] }
 0x17b   : > { %1049 = vst [vmem:[#allocation4 + $0x10] sm:$0xff] %v1017_v35  ;;  %1065 = vst [vmem:[#allocation4 + $0x90] sm:$0xff] %v1033_v36  ;;  %v1018_v39 = vadd.f32 %v1912_v37, %v953_v32 }
 0x17c   : > { %816 = vst [vmem:[#allocation3 + $0x18] sm:$0xff] %v1912_v37  ;;  %832 = vst [vmem:[#allocation3 + $0x98] sm:$0xff] %v1960_v38  ;;  %v1034_v40 = vadd.f32 %v1960_v38, %v969_v34 }
 0x17d   : > { %1050 = vst [vmem:[#allocation4 + $0x18] sm:$0xff] %v1018_v39  ;;  %v1913_v41 = vpop.f32.mrb[8].mxu0  ;;  %v1961_v42 = vpop.f32.mrb[8].mxu1 }
 0x17e   : > { %1066 = vst [vmem:[#allocation4 + $0x98] sm:$0xff] %v1034_v40  ;;  %v1914_v43 = vpop.f32.mrb[9].mxu0  ;;  %v1962_v45 = vpop.f32.mrb[9].mxu1  ;;  %v960_v40 = vld [vmem:[#allocation4 + $0x50] sm:$0xff] }
 0x17f   : > { %v1915_v47 = vadd.f32 %v1914_v43, %v1913_v41  ;;  %v1963_v48 = vadd.f32 %v1962_v45, %v1961_v42  ;;  %v1916_v49 = vpop.f32.mrb[10].mxu0  ;;  %v1964_v50 = vpop.f32.mrb[10].mxu1  ;;  %v976_v42 = vld [vmem:[#allocation4 + $0xd0] sm:$0xff] }
 0x180   : > { %v1917_v51 = vpop.f32.mrb[11].mxu0  ;;  %v1965_v53 = vpop.f32.mrb[11].mxu1 }
 0x181   : > { %817 = vst [vmem:[#allocation3 + $0x20] sm:$0xff] %v1915_v47  ;;  %v1019_v55 = vadd.f32 %v1915_v47, %v954_v44  ;;  %833 = vst [vmem:[#allocation3 + $0xa0] sm:$0xff] %v1963_v48  ;;  %v1035_v56 = vadd.f32 %v1963_v48, %v970_v46  ;;  %v1918_v57 = vadd.f32 %v1917_v51, %v1916_v49  ;;  %v961_v48 = vld [vmem:[#allocation4 + $0x58] sm:$0xff] }
 0x182   : > { %v1966_v58 = vadd.f32 %v1965_v53, %v1964_v50  ;;  %v977_v50 = vld [vmem:[#allocation4 + $0xd8] sm:$0xff] }
 0x183   : > { %1051 = vst [vmem:[#allocation4 + $0x20] sm:$0xff] %v1019_v55  ;;  %1067 = vst [vmem:[#allocation4 + $0xa0] sm:$0xff] %v1035_v56  ;;  %v1020_v59 = vadd.f32 %v1918_v57, %v955_v52 }
 0x184   : > { %818 = vst [vmem:[#allocation3 + $0x28] sm:$0xff] %v1918_v57  ;;  %834 = vst [vmem:[#allocation3 + $0xa8] sm:$0xff] %v1966_v58  ;;  %v1036_v60 = vadd.f32 %v1966_v58, %v971_v54 }
 0x185   : > { %1052 = vst [vmem:[#allocation4 + $0x28] sm:$0xff] %v1020_v59  ;;  %v1919_v61 = vpop.f32.mrb[12].mxu0  ;;  %v1967_v62 = vpop.f32.mrb[12].mxu1 }
 0x186   : > { %1068 = vst [vmem:[#allocation4 + $0xa8] sm:$0xff] %v1036_v60  ;;  %v1920_v63 = vpop.f32.mrb[13].mxu0  ;;  %v1968_v1 = vpop.f32.mrb[13].mxu1  ;;  %v962_v60 = vld [vmem:[#allocation4 + $0x60] sm:$0xff] }
 0x187   : > { %v1921_v3 = vadd.f32 %v1920_v63, %v1919_v61  ;;  %v1969_v4 = vadd.f32 %v1968_v1, %v1967_v62  ;;  %v1922_v5 = vpop.f32.mrb[14].mxu0  ;;  %v1970_v6 = vpop.f32.mrb[14].mxu1  ;;  %v978_v62 = vld [vmem:[#allocation4 + $0xe0] sm:$0xff] }
 0x188   : > { %v1923_v7 = vpop.f32.mrb[15].mxu0  ;;  %v1971_v9 = vpop.f32.mrb[15].mxu1 }
 0x189   : > { %819 = vst [vmem:[#allocation3 + $0x30] sm:$0xff] %v1921_v3  ;;  %v1021_v11 = vadd.f32 %v1921_v3, %v956_v0  ;;  %835 = vst [vmem:[#allocation3 + $0xb0] sm:$0xff] %v1969_v4  ;;  %v1037_v12 = vadd.f32 %v1969_v4, %v972_v2  ;;  %v1924_v13 = vadd.f32 %v1923_v7, %v1922_v5  ;;  %v963_v4 = vld [vmem:[#allocation4 + $0x68] sm:$0xff] }
 0x18a   : > { %v1972_v14 = vadd.f32 %v1971_v9, %v1970_v6  ;;  %v979_v6 = vld [vmem:[#allocation4 + $0xe8] sm:$0xff] }
 0x18b   : > { %1053 = vst [vmem:[#allocation4 + $0x30] sm:$0xff] %v1021_v11  ;;  %1069 = vst [vmem:[#allocation4 + $0xb0] sm:$0xff] %v1037_v12  ;;  %v1022_v15 = vadd.f32 %v1924_v13, %v957_v8 }
 0x18c   : > { %820 = vst [vmem:[#allocation3 + $0x38] sm:$0xff] %v1924_v13  ;;  %836 = vst [vmem:[#allocation3 + $0xb8] sm:$0xff] %v1972_v14  ;;  %v1038_v16 = vadd.f32 %v1972_v14, %v973_v10 }
 0x18d   : > { %1054 = vst [vmem:[#allocation4 + $0x38] sm:$0xff] %v1022_v15  ;;  %v1925_v17 = vpop.f32.mrb[16].mxu0  ;;  %v1973_v18 = vpop.f32.mrb[16].mxu1 }
 0x18e   : > { %1070 = vst [vmem:[#allocation4 + $0xb8] sm:$0xff] %v1038_v16  ;;  %v1926_v19 = vpop.f32.mrb[17].mxu0  ;;  %v1974_v21 = vpop.f32.mrb[17].mxu1  ;;  %v964_v16 = vld [vmem:[#allocation4 + $0x70] sm:$0xff] }
 0x18f   : > { %v1927_v23 = vadd.f32 %v1926_v19, %v1925_v17  ;;  %v1975_v24 = vadd.f32 %v1974_v21, %v1973_v18  ;;  %v1928_v25 = vpop.f32.mrb[18].mxu0  ;;  %v1976_v26 = vpop.f32.mrb[18].mxu1  ;;  %v980_v18 = vld [vmem:[#allocation4 + $0xf0] sm:$0xff] }
 0x190   : > { %v1929_v27 = vpop.f32.mrb[19].mxu0  ;;  %v1977_v29 = vpop.f32.mrb[19].mxu1 }
 0x191   : > { %821 = vst [vmem:[#allocation3 + $0x40] sm:$0xff] %v1927_v23  ;;  %v1023_v31 = vadd.f32 %v1927_v23, %v958_v20  ;;  %837 = vst [vmem:[#allocation3 + $0xc0] sm:$0xff] %v1975_v24  ;;  %v1039_v32 = vadd.f32 %v1975_v24, %v974_v22  ;;  %v1930_v33 = vadd.f32 %v1929_v27, %v1928_v25  ;;  %v965_v24 = vld [vmem:[#allocation4 + $0x78] sm:$0xff] }
 0x192   : > { %v1978_v34 = vadd.f32 %v1977_v29, %v1976_v26  ;;  %v981_v26 = vld [vmem:[#allocation4 + $0xf8] sm:$0xff] }
 0x193   : > { %1055 = vst [vmem:[#allocation4 + $0x40] sm:$0xff] %v1023_v31  ;;  %1071 = vst [vmem:[#allocation4 + $0xc0] sm:$0xff] %v1039_v32  ;;  %v1024_v35 = vadd.f32 %v1930_v33, %v959_v28 }
 0x194   : > { %822 = vst [vmem:[#allocation3 + $0x48] sm:$0xff] %v1930_v33  ;;  %838 = vst [vmem:[#allocation3 + $0xc8] sm:$0xff] %v1978_v34  ;;  %v1040_v36 = vadd.f32 %v1978_v34, %v975_v30  ;;  %v2234_v33 = vld [vmem:[#allocation10] sm:$0xff] (!%p1788_p5)   ;;  %v2235_v34 = vld [vmem:[#allocation10 + $0x8] sm:$0xff] (!%p1788_p5)  }
 0x195   : > { %1056 = vst [vmem:[#allocation4 + $0x48] sm:$0xff] %v1024_v35  ;;  %v1931_v37 = vpop.f32.mrb[20].mxu0  ;;  %v1979_v38 = vpop.f32.mrb[20].mxu1  ;;  %2021 = vmatprep.subr.bf16.mxu0 (!%p1788_p5), %v2234_v33  ;;  %2085 = vmatprep.subr.bf16.mxu1 (!%p1788_p5), %v2234_v33  ;;  %v2236_v35 = vld [vmem:[#allocation10 + $0x10] sm:$0xff] (!%p1788_p5)  }
 0x196   : > { %1072 = vst [vmem:[#allocation4 + $0xc8] sm:$0xff] %v1040_v36  ;;  %v1932_v39 = vpop.f32.mrb[21].mxu0  ;;  %v1980_v41 = vpop.f32.mrb[21].mxu1  ;;  %2022 = vmatpush3.bf16.msra.mxu0 (!%p1788_p5), %v2234_v33  ;;  %2093 = vmatpush3.bf16.msra.mxu1 (!%p1788_p5), %v2234_v33  ;;  %v2237_v36 = vld [vmem:[#allocation10 + $0x18] sm:$0xff] (!%p1788_p5)  }
 0x197   : > { %v1933_v43 = vadd.f32 %v1932_v39, %v1931_v37  ;;  %v1981_v44 = vadd.f32 %v1980_v41, %v1979_v38  ;;  %v1934_v45 = vpop.f32.mrb[22].mxu0  ;;  %v1982_v46 = vpop.f32.mrb[22].mxu1  ;;  %2023 = vmatprep.subr.bf16.mxu0 (!%p1788_p5), %v2235_v34  ;;  %2086 = vmatprep.subr.bf16.mxu1 (!%p1788_p5), %v2235_v34  ;;  %v1807_v37 = vld [vmem:[#allocation8] sm:$0xff] (!%p1788_p5)   ;;  %v1184_v39 = vld [vmem:[#allocation4 + $0x8] sm:$0xff] (!%p1788_p5) }
 0x198   : > { %v1935_v47 = vpop.f32.mrb[23].mxu0  ;;  %v1983_v49 = vpop.f32.mrb[23].mxu1  ;;  %v1183_v38 = vld [vmem:[#allocation4] sm:$0xff] (!%p1788_p5)  ;;  %v1809_v41 = vunpack.c.h.bf16 (!%p1788_p5), %v1807_v37 }
 0x199   : > { %823 = vst [vmem:[#allocation3 + $0x50] sm:$0xff] %v1933_v43  ;;  %v1025_v51 = vadd.f32 %v1933_v43, %v960_v40  ;;  %839 = vst [vmem:[#allocation3 + $0xd0] sm:$0xff] %v1981_v44  ;;  %v1041_v52 = vadd.f32 %v1981_v44, %v976_v42  ;;  %v1936_v53 = vadd.f32 %v1935_v47, %v1934_v45  ;;  %v1808_v40 = vunpack.c.l.bf16 (!%p1788_p5), %v1807_v37  ;;  %v1877_v44 = vld [vmem:[#allocation8 + $0x40] sm:$0xff] (!%p1788_p5)  }
 0x19a   : > { %v1984_v54 = vadd.f32 %v1983_v49, %v1982_v46  ;;  %2024 = vmatpush3.bf16.msra.mxu0 (!%p1788_p5), %v2235_v34  ;;  %2094 = vmatpush3.bf16.msra.mxu1 (!%p1788_p5), %v2235_v34  ;;  %v1215_v42 = vmul.f32 (!%p1788_p5), 0.31666666, %v1183_v38  ;;  %v1216_v43 = vmul.f32 (!%p1788_p5), 0.31666666, %v1184_v39  ;;  %v1199_v45 = vld [vmem:[#allocation4 + $0x80] sm:$0xff] (!%p1788_p5)  ;;  %v1840_v47 = vunpack.c.l.bf16 (!%p1788_p5), %v1877_v44  ;;  %v1200_v49 = vld [vmem:[#allocation4 + $0x88] sm:$0xff] (!%p1788_p5) }
 0x19b   : > { %1057 = vst [vmem:[#allocation4 + $0x50] sm:$0xff] %v1025_v51  ;;  %1073 = vst [vmem:[#allocation4 + $0xd0] sm:$0xff] %v1041_v52  ;;  %v1026_v55 = vadd.f32 %v1936_v53, %v961_v48  ;;  %2025 = vmatprep.subr.bf16.mxu0 (!%p1788_p5), %v2236_v35  ;;  %2087 = vmatprep.subr.bf16.mxu1 (!%p1788_p5), %v2236_v35  ;;  %v2238_v46 = vld [vmem:[#allocation10 + $0x20] sm:$0xff] (!%p1788_p5)   ;;  %v1841_v48 = vunpack.c.h.bf16 (!%p1788_p5), %v1877_v44  ;;  %v1870_v51 = vld [vmem:[#allocation8 + $0x8] sm:$0xff] (!%p1788_p5)   ;;  %v1151_v52 = vmul.f32 (!%p1788_p5), 0.05, %v1808_v40 }
 0x19c   : > { %824 = vst [vmem:[#allocation3 + $0x58] sm:$0xff] %v1936_v53  ;;  %840 = vst [vmem:[#allocation3 + $0xd8] sm:$0xff] %v1984_v54  ;;  %v1042_v56 = vadd.f32 %v1984_v54, %v977_v50  ;;  %v1231_v50 = vmul.f32 (!%p1788_p5), 0.31666666, %v1199_v45  ;;  %v1152_v53 = vmul.f32 (!%p1788_p5), 0.05, %v1809_v41 }
 0x19d   : > { %1058 = vst [vmem:[#allocation4 + $0x58] sm:$0xff] %v1026_v55  ;;  %v1937_v57 = vpop.f32.mrb[24].mxu0  ;;  %v1985_v58 = vpop.f32.mrb[24].mxu1  ;;  %v1232_v54 = vmul.f32 (!%p1788_p5), 0.31666666, %v1200_v49  ;;  %v1812_v55 = vunpack.c.l.bf16 (!%p1788_p5), %v1870_v51  ;;  %v1189_v40 = vld [vmem:[#allocation4 + $0x30] sm:$0xff] (!%p1788_p5) }
 0x19e   : > { %1074 = vst [vmem:[#allocation4 + $0xd8] sm:$0xff] %v1042_v56  ;;  %v1938_v59 = vpop.f32.mrb[25].mxu0  ;;  %v1986_v61 = vpop.f32.mrb[25].mxu1  ;;  %2026 = vmatpush3.bf16.msra.mxu0 (!%p1788_p5), %v2236_v35  ;;  %2095 = vmatpush3.bf16.msra.mxu1 (!%p1788_p5), %v2236_v35  ;;  %v1167_v56 = vmul.f32 (!%p1788_p5), 0.05, %v1840_v47  ;;  %v1880_v35 = vld [vmem:[#allocation8 + $0x58] sm:$0xff] (!%p1788_p5)  }
 0x19f   : > { %v1939_v63 = vadd.f32 %v1938_v59, %v1937_v57  ;;  %v1987_v0 = vadd.f32 %v1986_v61, %v1985_v58  ;;  %v1940_v1 = vpop.f32.mrb[26].mxu0  ;;  %v1988_v2 = vpop.f32.mrb[26].mxu1  ;;  %2027 = vmatprep.subr.bf16.mxu0 (!%p1788_p5), %v2237_v36  ;;  %2088 = vmatprep.subr.bf16.mxu1 (!%p1788_p5), %v2237_v36  ;;  %v1168_v57 = vmul.f32 (!%p1788_p5), 0.05, %v1841_v48  ;;  %v1813_v58 = vunpack.c.h.bf16 (!%p1788_p5), %v1870_v51  ;;  %v1185_v59 = vld [vmem:[#allocation4 + $0x10] sm:$0xff] (!%p1788_p5)  ;;  %v1190_v41 = vld [vmem:[#allocation4 + $0x38] sm:$0xff] (!%p1788_p5) }
 0x1a0   : > { %v1941_v3 = vpop.f32.mrb[27].mxu0  ;;  %v1989_v5 = vpop.f32.mrb[27].mxu1  ;;  %v1247_v61 = vadd.f32 (!%p1788_p5), %v1215_v42, %v1151_v52  ;;  %v1873_v47 = vld [vmem:[#allocation8 + $0x20] sm:$0xff] (!%p1788_p5)   ;;  %v2241_v48 = vld [vmem:[#allocation10 + $0x38] sm:$0xff] (!%p1788_p5)   ;;  %v1852_v52 = vunpack.c.l.bf16 (!%p1788_p5), %v1880_v35 }
 0x1a1   : > { %825 = vst [vmem:[#allocation3 + $0x60] sm:$0xff] %v1939_v63  ;;  %v1027_v7 = vadd.f32 %v1939_v63, %v962_v60  ;;  %841 = vst [vmem:[#allocation3 + $0xe0] sm:$0xff] %v1987_v0  ;;  %v1043_v8 = vadd.f32 %v1987_v0, %v978_v62  ;;  %v1942_v9 = vadd.f32 %v1941_v3, %v1940_v1  ;;  %v1878_v60 = vld [vmem:[#allocation8 + $0x48] sm:$0xff] (!%p1788_p5)   ;;  %v1186_v63 = vld [vmem:[#allocation4 + $0x18] sm:$0xff] (!%p1788_p5) }
 0x1a2   : > { %v1990_v10 = vadd.f32 %v1989_v5, %v1988_v2  ;;  %v1248_v62 = vadd.f32 (!%p1788_p5), %v1216_v43, %v1152_v53  ;;  %v1263_v0 = vadd.f32 (!%p1788_p5), %v1231_v50, %v1167_v56  ;;  %v1264_v1 = vadd.f32 (!%p1788_p5), %v1232_v54, %v1168_v57  ;;  %v1201_v3 = vld [vmem:[#allocation4 + $0x90] sm:$0xff] (!%p1788_p5)  ;;  %2028 = vmatpush3.bf16.msra.mxu0 (!%p1788_p5), %v2237_v36  ;;  %v1206_v53 = vld [vmem:[#allocation4 + $0xb8] sm:$0xff] (!%p1788_p5)  ;;  %v1191_v54 = vld [vmem:[#allocation4 + $0x40] sm:$0xff] (!%p1788_p5) }
 0x1a3   : > { %1059 = vst [vmem:[#allocation4 + $0x60] sm:$0xff] %v1027_v7  ;;  %1075 = vst [vmem:[#allocation4 + $0xe0] sm:$0xff] %v1043_v8  ;;  %v1028_v11 = vadd.f32 %v1942_v9, %v963_v4  ;;  %v1153_v2 = vmul.f32 (!%p1788_p5), 0.05, %v1812_v55  ;;  %v1202_v4 = vld [vmem:[#allocation4 + $0x98] sm:$0xff] (!%p1788_p5)  ;;  %v1871_v5 = vld [vmem:[#allocation8 + $0x10] sm:$0xff] (!%p1788_p5)   ;;  %2096 = vmatpush3.bf16.msra.mxu1 (!%p1788_p5), %v2237_v36  ;;  %2029 = vmatprep.subr.bf16.mxu0 (!%p1788_p5), %v2238_v46 }
 0x1a4   : > { %826 = vst [vmem:[#allocation3 + $0x68] sm:$0xff] %v1942_v9  ;;  %842 = vst [vmem:[#allocation3 + $0xe8] sm:$0xff] %v1990_v10  ;;  %v1044_v12 = vadd.f32 %v1990_v10, %v979_v6  ;;  %v2239_v6 = vld [vmem:[#allocation10 + $0x28] sm:$0xff] (!%p1788_p5)   ;;  %v1279_v7 = vpack.c.bf16 (!%p1788_p5), %v1248_v62, %v1247_v61  ;;  %v1217_v8 = vmul.f32 (!%p1788_p5), 0.31666666, %v1185_v59  ;;  %v1844_v9 = vunpack.c.l.bf16 (!%p1788_p5), %v1878_v60  ;;  %2089 = vmatprep.subr.bf16.mxu1 (!%p1788_p5), %v2238_v46 }
 0x1a5   : > { %1060 = vst [vmem:[#allocation4 + $0x68] sm:$0xff] %v1028_v11  ;;  %v1943_v13 = vpop.f32.mrb[28].mxu0  ;;  %v1991_v14 = vpop.f32.mrb[28].mxu1  ;;  %v1845_v10 = vunpack.c.h.bf16 (!%p1788_p5), %v1878_v60  ;;  %v1187_v11 = vld [vmem:[#allocation4 + $0x20] sm:$0xff] (!%p1788_p5)  ;;  %v1221_v56 = vmul.f32 (!%p1788_p5), 0.31666666, %v1189_v40  ;;  %v1824_v62 = vunpack.c.l.bf16 (!%p1788_p5), %v1873_v47 }
 0x1a6   : > { %1076 = vst [vmem:[#allocation4 + $0xe8] sm:$0xff] %v1044_v12  ;;  %v1944_v15 = vpop.f32.mrb[29].mxu0  ;;  %v1992_v17 = vpop.f32.mrb[29].mxu1  ;;  %v1879_v12 = vld [vmem:[#allocation8 + $0x50] sm:$0xff] (!%p1788_p5)   ;;  %2037 = vmatprep.mubr.bf16.mxu0 (!%p1788_p5), %v1279_v7  ;;  %2030 = vmatpush3.bf16.msra.mxu0 (!%p1788_p5), %v2238_v46  ;;  %v2554_v36 = vadd.f32 (!%p1788_p5), %v1217_v8, %v1153_v2  ;;  %v1222_v57 = vmul.f32 (!%p1788_p5), 0.31666666, %v1190_v41 }
 0x1a7   : > { %v1945_v19 = vadd.f32 %v1944_v15, %v1943_v13  ;;  %v1993_v20 = vadd.f32 %v1992_v17, %v1991_v14  ;;  %v1946_v21 = vpop.f32.mrb[30].mxu0  ;;  %v1994_v22 = vpop.f32.mrb[30].mxu1  ;;  %v1287_v13 = vpack.c.bf16 (!%p1788_p5), %v1264_v1, %v1263_v0  ;;  %v1154_v14 = vmul.f32 (!%p1788_p5), 0.05, %v1813_v58  ;;  %v1203_v17 = vld [vmem:[#allocation4 + $0xa0] sm:$0xff] (!%p1788_p5)  ;;  %2097 = vmatpush3.bf16.msra.mxu1 (!%p1788_p5), %v2238_v46  ;;  %2031 = vmatprep.subr.bf16.mxu0 (!%p1788_p5), %v2239_v6  ;;  %v1205_v46 = vld [vmem:[#allocation4 + $0xb0] sm:$0xff] (!%p1788_p5) }
 0x1a8   : > { %v1947_v23 = vpop.f32.mrb[31].mxu0  ;;  %v1995_v25 = vpop.f32.mrb[31].mxu1  ;;  %1082 = sbr.rel (%p1788_p5) target bundleno = 680 (0x2a8), region = 68  ;;  %v1218_v15 = vmul.f32 (!%p1788_p5), 0.31666666, %v1186_v63  ;;  %2090 = vmatprep.subr.bf16.mxu1 (!%p1788_p5), %v2239_v6  ;;  %v1853_v58 = vunpack.c.h.bf16 (!%p1788_p5), %v1880_v35  ;;  %v1192_v63 = vld [vmem:[#allocation4 + $0x48] sm:$0xff] (!%p1788_p5) }
 0x1a9   : > { %827 = vst [vmem:[#allocation3 + $0x70] sm:$0xff] %v1945_v19  ;;  %v1029_v27 = vadd.f32 %v1945_v19, %v964_v16  ;;  %843 = vst [vmem:[#allocation3 + $0xf0] sm:$0xff] %v1993_v20  ;;  %v1045_v28 = vadd.f32 %v1993_v20, %v980_v18  ;;  %v1948_v29 = vadd.f32 %v1947_v23, %v1946_v21  ;;  %v1188_v16 = vld [vmem:[#allocation4 + $0x28] sm:$0xff] (!%p1788_p5)  ;;  %v1233_v18 = vmul.f32 (!%p1788_p5), 0.31666666, %v1201_v3  ;;  %v1872_v23 = vld [vmem:[#allocation8 + $0x18] sm:$0xff] (!%p1788_p5)  }
 0x1aa   : > { %v1996_v30 = vadd.f32 %v1995_v25, %v1994_v22  ;;  %v1234_v19 = vmul.f32 (!%p1788_p5), 0.31666666, %v1202_v4  ;;  %v1816_v20 = vunpack.c.l.bf16 (!%p1788_p5), %v1871_v5  ;;  %v1817_v21 = vunpack.c.h.bf16 (!%p1788_p5), %v1871_v5  ;;  %v1204_v22 = vld [vmem:[#allocation4 + $0xa8] sm:$0xff] (!%p1788_p5)  ;;  %2053 = vmatprep.mubr.bf16.mxu1 (!%p1788_p5), %v1287_v13  ;;  %2032 = vmatpush3.bf16.msra.mxu0 (!%p1788_p5), %v2239_v6  ;;  %v1881_v0 = vld [vmem:[#allocation8 + $0x60] sm:$0xff] (!%p1788_p5)  }
 0x1ab   : > { %1061 = vst [vmem:[#allocation4 + $0x70] sm:$0xff] %v1029_v27  ;;  %1077 = vst [vmem:[#allocation4 + $0xf0] sm:$0xff] %v1045_v28  ;;  %v1030_v31 = vadd.f32 %v1948_v29, %v965_v24  ;;  %v1169_v24 = vmul.f32 (!%p1788_p5), 0.05, %v1844_v9  ;;  %v1170_v25 = vmul.f32 (!%p1788_p5), 0.05, %v1845_v10  ;;  %v1848_v27 = vunpack.c.l.bf16 (!%p1788_p5), %v1879_v12  ;;  %2098 = vmatpush3.bf16.msra.mxu1 (!%p1788_p5), %v2239_v6 }
 0x1ac   : > { %828 = vst [vmem:[#allocation3 + $0x78] sm:$0xff] %v1948_v29  ;;  %844 = vst [vmem:[#allocation3 + $0xf8] sm:$0xff] %v1996_v30  ;;  %v1046_v32 = vadd.f32 %v1996_v30, %v981_v26  ;;  %v1219_v26 = vmul.f32 (!%p1788_p5), 0.31666666, %v1187_v11  ;;  %v1155_v28 = vmul.f32 (!%p1788_p5), 0.05, %v1816_v20  ;;  %v2556_v37 = vadd.f32 (!%p1788_p5), %v1218_v15, %v1154_v14 }
 0x1ad   : > { %1062 = vst [vmem:[#allocation4 + $0x78] sm:$0xff] %v1030_v31  ;;  %v1156_v29 = vmul.f32 (!%p1788_p5), 0.05, %v1817_v21  ;;  %v1220_v30 = vmul.f32 (!%p1788_p5), 0.31666666, %v1188_v16  ;;  %v2240_v31 = vld [vmem:[#allocation10 + $0x30] sm:$0xff] (!%p1788_p5)   ;;  %v1820_v39 = vunpack.c.l.bf16 (!%p1788_p5), %v1872_v23  ;;  %v2558_v42 = vadd.f32 (!%p1788_p5), %v1233_v18, %v1169_v24 }
 0x1ae   : > { %1078 = vst [vmem:[#allocation4 + $0xf8] sm:$0xff] %v1046_v32  ;;  %v1849_v32 = vunpack.c.h.bf16 (!%p1788_p5), %v1879_v12  ;;  %v1171_v33 = vmul.f32 (!%p1788_p5), 0.05, %v1848_v27  ;;  %v1235_v34 = vmul.f32 (!%p1788_p5), 0.31666666, %v1203_v17  ;;  %v2560_v43 = vadd.f32 (!%p1788_p5), %v1234_v19, %v1170_v25  ;;  %2033 = vmatprep.subr.bf16.mxu0 (!%p1788_p5), %v2240_v31  ;;  %2091 = vmatprep.subr.bf16.mxu1 (!%p1788_p5), %v2240_v31  ;;  %v1207_v8 = vld [vmem:[#allocation4 + $0xc0] sm:$0xff] (!%p1788_p5) }
 0x1af   : > { %v1236_v38 = vmul.f32 0.31666666, %v1204_v22  ;;  %v1821_v45 = vunpack.c.h.bf16 %v1872_v23  ;;  %v2562_v49 = vadd.f32 %v1219_v26, %v1155_v28  ;;  %v2564_v50 = vadd.f32 %v1220_v30, %v1156_v29  ;;  %2034 = vmatpush3.bf16.msra.mxu0 %v2240_v31  ;;  %2099 = vmatpush3.bf16.msra.mxu1 %v2240_v31  ;;  %v1208_v9 = vld [vmem:[#allocation4 + $0xc8] sm:$0xff]  ;;  %v1193_v24 = vld [vmem:[#allocation4 + $0x50] sm:$0xff]  ;;  %v1194_v25 = vld [vmem:[#allocation4 + $0x58] sm:$0xff] }
 0x1b0   : > { %v1172_v44 = vmul.f32 0.05, %v1849_v32  ;;  %v2566_v51 = vadd.f32 %v1235_v34, %v1171_v33  ;;  %v1157_v55 = vmul.f32 0.05, %v1820_v39  ;;  %v1237_v61 = vmul.f32 0.31666666, %v1205_v46  ;;  %2035 = vmatprep.subr.bf16.mxu0 %v2241_v48  ;;  %2092 = vmatprep.subr.bf16.mxu1 %v2241_v48 }
 0x1b1   : > { %v1158_v60 = vmul.f32 0.05, %v1821_v45  ;;  %v1173_v1 = vmul.f32 0.05, %v1852_v52  ;;  %v1174_v2 = vmul.f32 0.05, %v1853_v58  ;;  %v1825_v4 = vunpack.c.h.bf16 %v1873_v47 }
 0x1b2   : > { %v1268_v59 = vadd.f32 %v1236_v38, %v1172_v44  ;;  %v1238_v3 = vmul.f32 0.31666666, %v1206_v53  ;;  %v1280_v5 = vpack.c.bf16 %v2556_v37, %v2554_v36  ;;  %v1288_v6 = vpack.c.bf16 %v2560_v43, %v2558_v42  ;;  %v1874_v10 = vld [vmem:[#allocation8 + $0x28] sm:$0xff]   ;;  %v1875_v26 = vld [vmem:[#allocation8 + $0x30] sm:$0xff]   ;;  %v1210_v38 = vld [vmem:[#allocation4 + $0xd8] sm:$0xff] }
 0x1b3   : > { %v1159_v7 = vmul.f32 0.05, %v1824_v62  ;;  %v1160_v11 = vmul.f32 0.05, %v1825_v4  ;;  %v1223_v12 = vmul.f32 0.31666666, %v1191_v54  ;;  %v1856_v14 = vunpack.c.l.bf16 %v1881_v0  ;;  %2036 = vmatpush3.bf16.msra.mxu0 %v2241_v48  ;;  %2100 = vmatpush3.bf16.msra.mxu1 %v2241_v48 }
 0x1b4   : > { %v1224_v13 = vmul.f32 0.31666666, %v1192_v63  ;;  %v1281_v15 = vpack.c.bf16 %v2564_v50, %v2562_v49  ;;  %v2574_v16 = vadd.f32 %v1221_v56, %v1157_v55  ;;  %v2576_v17 = vadd.f32 %v1222_v57, %v1158_v60  ;;  %v1882_v19 = vld [vmem:[#allocation8 + $0x68] sm:$0xff]   ;;  %v1209_v37 = vld [vmem:[#allocation4 + $0xd0] sm:$0xff]  ;;  %v1195_v43 = vld [vmem:[#allocation4 + $0x60] sm:$0xff] }
 0x1b5   : > { %v1857_v18 = vunpack.c.h.bf16 %v1881_v0  ;;  %v1289_v20 = vpack.c.bf16 %v1268_v59, %v2566_v51  ;;  %v2579_v21 = vadd.f32 %v1237_v61, %v1173_v1  ;;  %v2581_v22 = vadd.f32 %v1238_v3, %v1174_v2  ;;  %v1883_v44 = vld [vmem:[#allocation8 + $0x70] sm:$0xff]   ;;  %v1196_v49 = vld [vmem:[#allocation4 + $0x68] sm:$0xff]  ;;  %v1211_v50 = vld [vmem:[#allocation4 + $0xe0] sm:$0xff] }
 0x1b6   : > { %v1239_v23 = vmul.f32 0.31666666, %v1207_v8  ;;  %v1175_v27 = vmul.f32 0.05, %v1856_v14  ;;  %v1240_v29 = vmul.f32 0.31666666, %v1208_v9  ;;  %v1828_v30 = vunpack.c.l.bf16 %v1874_v10  ;;  %2038 = vmatmul.mubr.bf16.vlgmr.msra.gmra.mrb[0].mxu0 %v1280_v5  ;;  %2054 = vmatmul.mubr.bf16.vlgmr.msra.gmra.mrb[0].mxu1 %v1288_v6 }
 0x1b7   : > { %v1176_v28 = vmul.f32 0.05, %v1857_v18  ;;  %v1255_v31 = vadd.f32 %v1223_v12, %v1159_v7  ;;  %v1256_v32 = vadd.f32 %v1224_v13, %v1160_v11  ;;  %v1829_v33 = vunpack.c.h.bf16 %v1874_v10  ;;  %2041 = vmatprep.mubr.bf16.mxu0 %v1281_v15  ;;  %2057 = vmatprep.mubr.bf16.mxu1 %v1289_v20  ;;  %v1212_v51 = vld [vmem:[#allocation4 + $0xe8] sm:$0xff]  ;;  %v1876_v56 = vld [vmem:[#allocation8 + $0x38] sm:$0xff]   ;;  %v1197_v12 = vld [vmem:[#allocation4 + $0x70] sm:$0xff] }
 0x1b8   : > { %v1860_v34 = vunpack.c.l.bf16 %v1882_v19  ;;  %v1282_v35 = vpack.c.bf16 %v2576_v17, %v2574_v16  ;;  %v1861_v36 = vunpack.c.h.bf16 %v1882_v19  ;;  %v1290_v39 = vpack.c.bf16 %v2581_v22, %v2579_v21  ;;  %v1884_v61 = vld [vmem:[#allocation8 + $0x78] sm:$0xff]   ;;  %v1213_v18 = vld [vmem:[#allocation4 + $0xf0] sm:$0xff] }
 0x1b9   : > { %v1225_v40 = vmul.f32 0.31666666, %v1193_v24  ;;  %v1226_v41 = vmul.f32 0.31666666, %v1194_v25  ;;  %v1832_v42 = vunpack.c.l.bf16 %v1875_v26  ;;  %v1271_v45 = vadd.f32 %v1239_v23, %v1175_v27  ;;  %v1198_v13 = vld [vmem:[#allocation4 + $0x78] sm:$0xff] }
 0x1ba   : > { %v1272_v46 = vadd.f32 %v1240_v29, %v1176_v28  ;;  %v1161_v47 = vmul.f32 0.05, %v1828_v30  ;;  %v1833_v48 = vunpack.c.h.bf16 %v1875_v26  ;;  %v1283_v52 = vpack.c.bf16 %v1256_v32, %v1255_v31  ;;  %v1214_v22 = vld [vmem:[#allocation4 + $0xf8] sm:$0xff] }
 0x1bb   : > { %v1162_v53 = vmul.f32 0.05, %v1829_v33  ;;  %v1177_v54 = vmul.f32 0.05, %v1860_v34  ;;  %v1241_v55 = vmul.f32 0.31666666, %v1209_v37  ;;  %v1864_v60 = vunpack.c.l.bf16 %v1883_v44 }
 0x1bc   : > { %v1178_v57 = vmul.f32 0.05, %v1861_v36  ;;  %v1242_v58 = vmul.f32 0.31666666, %v1210_v38  ;;  %v1163_v59 = vmul.f32 0.05, %v1832_v42  ;;  %v1865_v1 = vunpack.c.h.bf16 %v1883_v44 }
 0x1bd   : > { %v1164_v62 = vmul.f32 0.05, %v1833_v48  ;;  %v1227_v63 = vmul.f32 0.31666666, %v1195_v43  ;;  %v1228_v0 = vmul.f32 0.31666666, %v1196_v49  ;;  %v1291_v2 = vpack.c.bf16 %v1272_v46, %v1271_v45 }
 0x1be   : > { %v1179_v3 = vmul.f32 0.05, %v1864_v60  ;;  %v1243_v4 = vmul.f32 0.31666666, %v1211_v50  ;;  %v1244_v5 = vmul.f32 0.31666666, %v1212_v51  ;;  %v1257_v6 = vadd.f32 %v1225_v40, %v1161_v47  ;;  %2042 = vmatmul.mubr.bf16.gmra.mrb[4].mxu0 %v1282_v35  ;;  %2058 = vmatmul.mubr.bf16.gmra.mrb[4].mxu1 %v1290_v39 }
 0x1bf   : > { %v1180_v7 = vmul.f32 0.05, %v1865_v1  ;;  %v1258_v8 = vadd.f32 %v1226_v41, %v1162_v53  ;;  %v1273_v9 = vadd.f32 %v1241_v55, %v1177_v54  ;;  %v1836_v10 = vunpack.c.l.bf16 %v1876_v56  ;;  %2045 = vmatprep.mubr.bf16.mxu0 %v1283_v52  ;;  %2061 = vmatprep.mubr.bf16.mxu1 %v1291_v2  ;;  %v2590_v41 = vld [vmem:[%s2665_s3] ss:$0 sm:$0xff] }
 0x1c0   : > { %v1837_v11 = vunpack.c.h.bf16 %v1876_v56  ;;  %v1274_v14 = vadd.f32 %v1242_v58, %v1178_v57  ;;  %v1259_v15 = vadd.f32 %v1227_v63, %v1163_v59  ;;  %v1868_v16 = vunpack.c.l.bf16 %v1884_v61 }
 0x1c1   : > { %v1869_v17 = vunpack.c.h.bf16 %v1884_v61  ;;  %v1260_v19 = vadd.f32 %v1228_v0, %v1164_v62  ;;  %v1275_v20 = vadd.f32 %v1243_v4, %v1179_v3  ;;  %v1276_v21 = vadd.f32 %v1244_v5, %v1180_v7 }
 0x1c2   : > { %v1229_v23 = vmul.f32 0.31666666, %v1197_v12  ;;  %v1230_v24 = vmul.f32 0.31666666, %v1198_v13  ;;  %v1284_v25 = vpack.c.bf16 %v1258_v8, %v1257_v6  ;;  %v1165_v26 = vmul.f32 0.05, %v1836_v10 }
 0x1c3   : > { %v1166_v27 = vmul.f32 0.05, %v1837_v11  ;;  %v1245_v28 = vmul.f32 0.31666666, %v1213_v18  ;;  %v1292_v29 = vpack.c.bf16 %v1274_v14, %v1273_v9  ;;  %v1181_v30 = vmul.f32 0.05, %v1868_v16 }
 0x1c4   : > { %v1182_v31 = vmul.f32 0.05, %v1869_v17  ;;  %v1246_v32 = vmul.f32 0.31666666, %v1214_v22  ;;  %v1285_v33 = vpack.c.bf16 %v1260_v19, %v1259_v15  ;;  %v1293_v34 = vpack.c.bf16 %v1276_v21, %v1275_v20 }
 0x1c5   : > { %v1261_v35 = vadd.f32 %v1229_v23, %v1165_v26  ;;  %v1262_v36 = vadd.f32 %v1230_v24, %v1166_v27  ;;  %v1277_v37 = vadd.f32 %v1245_v28, %v1181_v30 }
 0x1c6   : > { %2046 = vmatmul.mubr.bf16.gmra.mrb[8].mxu0 %v1284_v25  ;;  %2062 = vmatmul.mubr.bf16.gmra.mrb[8].mxu1 %v1292_v29  ;;  %v1278_v38 = vadd.f32 %v1246_v32, %v1182_v31 }
 0x1c7   : > { %2049 = vmatprep.mubr.bf16.mxu0 %v1285_v33  ;;  %2065 = vmatprep.mubr.bf16.mxu1 %v1293_v34  ;;  %v1286_v39 = vpack.c.bf16 %v1262_v36, %v1261_v35 }
 0x1c8   : > { %v1294_v40 = vpack.c.bf16 %v1278_v38, %v1277_v37 }
 0x1ce   : > { %2050 = vmatmul.mubr.bf16.gmra.mrb[12].mxu0 %v1286_v39  ;;  %2066 = vmatmul.mubr.bf16.gmra.mrb[12].mxu1 %v1294_v40 }
 0x289   : > { %v2039_v42 = vpop.f32.mrb[0].mxu0  ;;  %v2055_v43 = vpop.f32.mrb[0].mxu1 }
 0x28a   : > { %v1409_v44 = vadd.f32 %v2039_v42, %v2590_v41  ;;  %v1473_v45 = vadd.f32 %v2055_v43, %v2590_v41  ;;  %v1400_v46 = vpop.f32.mrb[1].mxu0  ;;  %v1464_v47 = vpop.f32.mrb[1].mxu1 }
 0x28b   : > { %v1401_v48 = vadd.f32 %v2590_v41, %v1400_v46  ;;  %v1465_v49 = vadd.f32 %v2590_v41, %v1464_v47  ;;  %v2040_v50 = vpop.f32.mrb[2].mxu0  ;;  %v2056_v51 = vpop.f32.mrb[2].mxu1 }
 0x28c   : > { %1529 = vst [vmem:[#allocation11 + $0x10] sm:$0xff] %v1409_v44  ;;  %1545 = vst [vmem:[#allocation11 + $0x90] sm:$0xff] %v1473_v45  ;;  %v1412_v52 = vadd.f32 %v2040_v50, %v2590_v41  ;;  %v1476_v53 = vadd.f32 %v2056_v51, %v2590_v41  ;;  %v1403_v54 = vpop.f32.mrb[3].mxu0  ;;  %v1467_v55 = vpop.f32.mrb[3].mxu1 }
 0x28d   : > { %1527 = vst [vmem:[#allocation11] sm:$0xff] %v1401_v48  ;;  %1543 = vst [vmem:[#allocation11 + $0x80] sm:$0xff] %v1465_v49  ;;  %v1404_v56 = vadd.f32 %v2590_v41, %v1403_v54  ;;  %v1468_v57 = vadd.f32 %v2590_v41, %v1467_v55 }
 0x28e   : > { %1530 = vst [vmem:[#allocation11 + $0x18] sm:$0xff] %v1412_v52  ;;  %1546 = vst [vmem:[#allocation11 + $0x98] sm:$0xff] %v1476_v53 }
 0x28f   : > { %1528 = vst [vmem:[#allocation11 + $0x8] sm:$0xff] %v1404_v56  ;;  %1544 = vst [vmem:[#allocation11 + $0x88] sm:$0xff] %v1468_v57 }
 0x291   : > { %v2043_v58 = vpop.f32.mrb[4].mxu0  ;;  %v2059_v59 = vpop.f32.mrb[4].mxu1 }
 0x292   : > { %v1425_v60 = vadd.f32 %v2043_v58, %v2590_v41  ;;  %v1489_v61 = vadd.f32 %v2059_v59, %v2590_v41  ;;  %v1416_v62 = vpop.f32.mrb[5].mxu0  ;;  %v1480_v63 = vpop.f32.mrb[5].mxu1 }
 0x293   : > { %v1417_v0 = vadd.f32 %v2590_v41, %v1416_v62  ;;  %v1481_v1 = vadd.f32 %v2590_v41, %v1480_v63  ;;  %v2044_v2 = vpop.f32.mrb[6].mxu0  ;;  %v2060_v3 = vpop.f32.mrb[6].mxu1 }
 0x294   : > { %1533 = vst [vmem:[#allocation11 + $0x30] sm:$0xff] %v1425_v60  ;;  %1549 = vst [vmem:[#allocation11 + $0xb0] sm:$0xff] %v1489_v61  ;;  %v1428_v4 = vadd.f32 %v2044_v2, %v2590_v41  ;;  %v1492_v5 = vadd.f32 %v2060_v3, %v2590_v41  ;;  %v1419_v6 = vpop.f32.mrb[7].mxu0  ;;  %v1483_v7 = vpop.f32.mrb[7].mxu1 }
 0x295   : > { %1531 = vst [vmem:[#allocation11 + $0x20] sm:$0xff] %v1417_v0  ;;  %1547 = vst [vmem:[#allocation11 + $0xa0] sm:$0xff] %v1481_v1  ;;  %v1420_v8 = vadd.f32 %v2590_v41, %v1419_v6  ;;  %v1484_v9 = vadd.f32 %v2590_v41, %v1483_v7 }
 0x296   : > { %1534 = vst [vmem:[#allocation11 + $0x38] sm:$0xff] %v1428_v4  ;;  %1550 = vst [vmem:[#allocation11 + $0xb8] sm:$0xff] %v1492_v5 }
 0x297   : > { %1532 = vst [vmem:[#allocation11 + $0x28] sm:$0xff] %v1420_v8  ;;  %1548 = vst [vmem:[#allocation11 + $0xa8] sm:$0xff] %v1484_v9 }
 0x299   : > { %v2047_v10 = vpop.f32.mrb[8].mxu0  ;;  %v2063_v11 = vpop.f32.mrb[8].mxu1 }
 0x29a   : > { %v1441_v12 = vadd.f32 %v2047_v10, %v2590_v41  ;;  %v1505_v13 = vadd.f32 %v2063_v11, %v2590_v41  ;;  %v1432_v14 = vpop.f32.mrb[9].mxu0  ;;  %v1496_v15 = vpop.f32.mrb[9].mxu1 }
 0x29b   : > { %v1433_v16 = vadd.f32 %v2590_v41, %v1432_v14  ;;  %v1497_v17 = vadd.f32 %v2590_v41, %v1496_v15  ;;  %v2048_v18 = vpop.f32.mrb[10].mxu0  ;;  %v2064_v19 = vpop.f32.mrb[10].mxu1 }
 0x29c   : > { %1537 = vst [vmem:[#allocation11 + $0x50] sm:$0xff] %v1441_v12  ;;  %1553 = vst [vmem:[#allocation11 + $0xd0] sm:$0xff] %v1505_v13  ;;  %v1444_v20 = vadd.f32 %v2048_v18, %v2590_v41  ;;  %v1508_v21 = vadd.f32 %v2064_v19, %v2590_v41  ;;  %v1435_v22 = vpop.f32.mrb[11].mxu0  ;;  %v1499_v23 = vpop.f32.mrb[11].mxu1 }
 0x29d   : > { %1535 = vst [vmem:[#allocation11 + $0x40] sm:$0xff] %v1433_v16  ;;  %1551 = vst [vmem:[#allocation11 + $0xc0] sm:$0xff] %v1497_v17  ;;  %v1436_v24 = vadd.f32 %v2590_v41, %v1435_v22  ;;  %v1500_v25 = vadd.f32 %v2590_v41, %v1499_v23 }
 0x29e   : > { %1538 = vst [vmem:[#allocation11 + $0x58] sm:$0xff] %v1444_v20  ;;  %1554 = vst [vmem:[#allocation11 + $0xd8] sm:$0xff] %v1508_v21 }
 0x29f   : > { %1536 = vst [vmem:[#allocation11 + $0x48] sm:$0xff] %v1436_v24  ;;  %1552 = vst [vmem:[#allocation11 + $0xc8] sm:$0xff] %v1500_v25 }
 0x2a1   : > { %v2051_v26 = vpop.f32.mrb[12].mxu0  ;;  %v2067_v27 = vpop.f32.mrb[12].mxu1 }
 0x2a2   : > { %v1457_v28 = vadd.f32 %v2051_v26, %v2590_v41  ;;  %v1521_v29 = vadd.f32 %v2067_v27, %v2590_v41  ;;  %v1448_v30 = vpop.f32.mrb[13].mxu0  ;;  %v1512_v31 = vpop.f32.mrb[13].mxu1 }
 0x2a3   : > { %v1449_v32 = vadd.f32 %v2590_v41, %v1448_v30  ;;  %v1513_v33 = vadd.f32 %v2590_v41, %v1512_v31  ;;  %v2052_v34 = vpop.f32.mrb[14].mxu0  ;;  %v2068_v35 = vpop.f32.mrb[14].mxu1 }
 0x2a4   : > { %1541 = vst [vmem:[#allocation11 + $0x70] sm:$0xff] %v1457_v28  ;;  %1557 = vst [vmem:[#allocation11 + $0xf0] sm:$0xff] %v1521_v29  ;;  %v1460_v36 = vadd.f32 %v2052_v34, %v2590_v41  ;;  %v1524_v37 = vadd.f32 %v2068_v35, %v2590_v41  ;;  %v1451_v38 = vpop.f32.mrb[15].mxu0  ;;  %v1515_v39 = vpop.f32.mrb[15].mxu1 }
 0x2a5   : > { %1539 = vst [vmem:[#allocation11 + $0x60] sm:$0xff] %v1449_v32  ;;  %1555 = vst [vmem:[#allocation11 + $0xe0] sm:$0xff] %v1513_v33  ;;  %v1452_v40 = vadd.f32 %v2590_v41, %v1451_v38  ;;  %v1516_v42 = vadd.f32 %v2590_v41, %v1515_v39 }
 0x2a6   : > { %1542 = vst [vmem:[#allocation11 + $0x78] sm:$0xff] %v1460_v36  ;;  %1558 = vst [vmem:[#allocation11 + $0xf8] sm:$0xff] %v1524_v37 }
 0x2a7   : > { %1540 = vst [vmem:[#allocation11 + $0x68] sm:$0xff] %v1452_v40  ;;  %1556 = vst [vmem:[#allocation11 + $0xe8] sm:$0xff] %v1516_v42 }
 0x2a8 PF: > { %p1559_p10 = scmp.lt.s32.totalorder %s2378_s15, 2 }
 0x2a9   : > { %v1564_v43 = vld [vmem:[#allocation3] sm:$0xff] (%p1559_p10)  ;;  %v1565_v44 = vld [vmem:[#allocation3 + $0x8] sm:$0xff] (%p1559_p10)  ;;  %v1566_v45 = vld [vmem:[#allocation3 + $0x10] sm:$0xff] (%p1559_p10) }
 0x2aa   : > { %1563 = sbr.rel (!%p1559_p10) target bundleno = 696 (0x2b8), region = 72  ;;  %v1596_v46 = vpack.c.bf16 (%p1559_p10), %v1565_v44, %v1564_v43  ;;  %v1567_v47 = vld [vmem:[#allocation3 + $0x18] sm:$0xff] (%p1559_p10)  ;;  %v1568_v48 = vld [vmem:[#allocation3 + $0x20] sm:$0xff] (%p1559_p10)  ;;  %v1569_v49 = vld [vmem:[#allocation3 + $0x28] sm:$0xff] (%p1559_p10) }
 0x2ab   : > { %v1597_v50 = vpack.c.bf16 (%p1559_p10), %v1567_v47, %v1566_v45  ;;  %v1598_v51 = vpack.c.bf16 (%p1559_p10), %v1569_v49, %v1568_v48  ;;  %v1570_v52 = vld [vmem:[#allocation3 + $0x30] sm:$0xff] (%p1559_p10)  ;;  %v1571_v53 = vld [vmem:[#allocation3 + $0x38] sm:$0xff] (%p1559_p10)  ;;  %v1572_v41 = vld [vmem:[#allocation3 + $0x40] sm:$0xff] (%p1559_p10) }
 0x2ac   : > { %1612 = vst [vmem:[#allocation2] sm:$0xff] (%p1559_p10), %v1596_v46  ;;  %v1599_v54 = vpack.c.bf16 (%p1559_p10), %v1571_v53, %v1570_v52  ;;  %v1573_v55 = vld [vmem:[#allocation3 + $0x48] sm:$0xff] (%p1559_p10)  ;;  %v1574_v56 = vld [vmem:[#allocation3 + $0x50] sm:$0xff] (%p1559_p10)  ;;  %v1575_v57 = vld [vmem:[#allocation3 + $0x58] sm:$0xff] (%p1559_p10) }
 0x2ad   : > { %1613 = vst [vmem:[#allocation2 + $0x8] sm:$0xff] (%p1559_p10), %v1597_v50  ;;  %1614 = vst [vmem:[#allocation2 + $0x10] sm:$0xff] (%p1559_p10), %v1598_v51  ;;  %v1600_v58 = vpack.c.bf16 (%p1559_p10), %v1573_v55, %v1572_v41  ;;  %v1601_v59 = vpack.c.bf16 (%p1559_p10), %v1575_v57, %v1574_v56  ;;  %v1576_v60 = vld [vmem:[#allocation3 + $0x60] sm:$0xff] (%p1559_p10)  ;;  %v1577_v61 = vld [vmem:[#allocation3 + $0x68] sm:$0xff] (%p1559_p10) }
 0x2ae   : > { %v1578_v62 = vld [vmem:[#allocation3 + $0x70] sm:$0xff] (%p1559_p10)  ;;  %1615 = vst [vmem:[#allocation2 + $0x18] sm:$0xff] (%p1559_p10), %v1599_v54  ;;  %v1602_v63 = vpack.c.bf16 (%p1559_p10), %v1577_v61, %v1576_v60  ;;  %v1579_v0 = vld [vmem:[#allocation3 + $0x78] sm:$0xff] (%p1559_p10)  ;;  %v1580_v1 = vld [vmem:[#allocation3 + $0x80] sm:$0xff] (%p1559_p10) }
 0x2af   : > { %v1581_v2 = vld [vmem:[#allocation3 + $0x88] sm:$0xff] (%p1559_p10)  ;;  %1616 = vst [vmem:[#allocation2 + $0x20] sm:$0xff] (%p1559_p10), %v1600_v58  ;;  %1617 = vst [vmem:[#allocation2 + $0x28] sm:$0xff] (%p1559_p10), %v1601_v59  ;;  %v1603_v3 = vpack.c.bf16 (%p1559_p10), %v1579_v0, %v1578_v62  ;;  %v1582_v5 = vld [vmem:[#allocation3 + $0x90] sm:$0xff] (%p1559_p10) }
 0x2b0   : > { %v1604_v4 = vpack.c.bf16 (%p1559_p10), %v1581_v2, %v1580_v1  ;;  %v1583_v6 = vld [vmem:[#allocation3 + $0x98] sm:$0xff] (%p1559_p10)  ;;  %v1584_v7 = vld [vmem:[#allocation3 + $0xa0] sm:$0xff] (%p1559_p10)  ;;  %1618 = vst [vmem:[#allocation2 + $0x30] sm:$0xff] (%p1559_p10), %v1602_v63  ;;  %v1585_v9 = vld [vmem:[#allocation3 + $0xa8] sm:$0xff] (%p1559_p10) }
 0x2b1   : > { %v1605_v8 = vpack.c.bf16 %v1583_v6, %v1582_v5  ;;  %v1586_v10 = vld [vmem:[#allocation3 + $0xb0] sm:$0xff]  ;;  %v1587_v11 = vld [vmem:[#allocation3 + $0xb8] sm:$0xff]  ;;  %1619 = vst [vmem:[#allocation2 + $0x38] sm:$0xff] %v1603_v3  ;;  %v1606_v12 = vpack.c.bf16 %v1585_v9, %v1584_v7  ;;  %v1588_v14 = vld [vmem:[#allocation3 + $0xc0] sm:$0xff] }
 0x2b2   : > { %1620 = vst [vmem:[#allocation2 + $0x40] sm:$0xff] %v1604_v4  ;;  %v1607_v13 = vpack.c.bf16 %v1587_v11, %v1586_v10  ;;  %v1589_v15 = vld [vmem:[#allocation3 + $0xc8] sm:$0xff]  ;;  %v1590_v16 = vld [vmem:[#allocation3 + $0xd0] sm:$0xff]  ;;  %v1591_v18 = vld [vmem:[#allocation3 + $0xd8] sm:$0xff] }
 0x2b3   : > { %1621 = vst [vmem:[#allocation2 + $0x48] sm:$0xff] %v1605_v8  ;;  %v1608_v17 = vpack.c.bf16 %v1589_v15, %v1588_v14  ;;  %v1592_v19 = vld [vmem:[#allocation3 + $0xe0] sm:$0xff]  ;;  %v1593_v20 = vld [vmem:[#allocation3 + $0xe8] sm:$0xff]  ;;  %1622 = vst [vmem:[#allocation2 + $0x50] sm:$0xff] %v1606_v12  ;;  %v1609_v21 = vpack.c.bf16 %v1591_v18, %v1590_v16 }
 0x2b4   : > { %1623 = vst [vmem:[#allocation2 + $0x58] sm:$0xff] %v1607_v13  ;;  %v1610_v22 = vpack.c.bf16 %v1593_v20, %v1592_v19  ;;  %v1594_v23 = vld [vmem:[#allocation3 + $0xf0] sm:$0xff]  ;;  %v1595_v24 = vld [vmem:[#allocation3 + $0xf8] sm:$0xff] }
 0x2b5   : > { %1624 = vst [vmem:[#allocation2 + $0x60] sm:$0xff] %v1608_v17  ;;  %v1611_v25 = vpack.c.bf16 %v1595_v24, %v1594_v23  ;;  %1625 = vst [vmem:[#allocation2 + $0x68] sm:$0xff] %v1609_v21 }
 0x2b6   : > { %1626 = vst [vmem:[#allocation2 + $0x70] sm:$0xff] %v1610_v22 }
 0x2b7   : > { %1627 = vst [vmem:[#allocation2 + $0x78] sm:$0xff] %v1611_v25 }
 0x2b8 PF: > { %p2627_p11 = scmp.eq.s32.totalorder %s1729_s20, 2  ;;  %s2396_s23 = smov [#allocation11]  }
 0x2b9   : > { %s1637_s7 = sshll.u32 %s2396_s23, 4  ;;  %s1638_s7 = int_to_ptr.vmem [resolvable:$true] %s1637_s7 }
 0x2ba   : > { %s2326_s11 = scalar_lea.vmem %s1638_s7, 4096  ;;  %p2333_p0 = scmp.lt.s32.totalorder %s1638_s7, %s1638_s7 }
 0x2bb   : > { %p2327_p12 = scmp.ne.s32.totalorder %s1638_s7, %s2326_s11  ;;  %p2334_p1 = scmp.lt.s32.totalorder %s2326_s11, %s2326_s11 }
 0x2bd   : > { %p2328_p13 = pnand %p2327_p12, %p2627_p11  ;;  %p2335_p4 = por %p2334_p1, %p2333_p0 }
 0x2bf   : > { %p2329_p6 = pneg %p2328_p13 }
 0x2c1   : > { %p2336_p7 = pnand %p2335_p4, %p2329_p6 }
 0x2c3   : > { %2339 = shalt.err (!%p2336_p7)
}
 0x2c4   : > { %s2340_s20 = scalar_lea.hbm %s2666_s4, 4096 }
 0x2c5   : > { %p2341_p9 = scmp.ne.s32.totalorder %s2666_s4, %s2340_s20  ;;  %p2346_p2 = scmp.lt.u32.totalorder %s2340_s20, %s2666_s4 }
 0x2c7   : > { %p2342_p3 = pnand %p2341_p9, %p2627_p11 }
 0x2c9   : > { %p2343_p8 = pneg %p2342_p3 }
 0x2cb   : > { %p2348_p5 = pnand %p2346_p2, %p2343_p8 }
 0x2cd   : > { %2351 = shalt.err (!%p2348_p5)
}
 0x2ce   : > { %s2397_s18 = smov 128   ;;  %s2398_s26 = smov 8  }
 0x2cf   : > { %2114 = dma.vmem_to_hbm [thread:$0]  (%p2627_p11), %s1638_s7, 4096, %s2666_s4, [#allocation7], %s2397_s18, %s2397_s18, %s2398_s26  }
 0x2d0   : > { %2373 = dma.done.wait (%p2627_p11), [#allocation7], 4096  }
 0x2d1   : > { %2375 = vsyncadd (%p2627_p11), [#allocation7], 4294963200 }
 0x2d2 PF: > { %s17_s17 = sadd.s32 1, %s2386_s17   ;;  %s2678_s15 = smov %s2382_s16 }
 0x2d3   : > { %p14_p10 = scmp.ge.s32.totalorder %s17_s17, 5   ;;  %s2679_s16 = smov %s2681_s24 }
 0x2d5   :  { %16 = sbr.rel (!%p14_p10) target bundleno = 4 (0x4), region = 105 }
 0x2dc   :  { %1653 = vsyncpa [#allocation6], 1 }
 0x2dd   :  { %1655 = vsyncpa [#allocation6 + $0x1], 1 }
 0x2de   :  { %1656 = vsyncpa [#allocation9], 1 }
 0x2df   :  { %1657 = vsyncpa [#allocation7], 1 }
 0x2e0   :  { %1659 = vsyncpa [#allocation7 + $0x1], 1 }

</bundles_post_ra>
